<compile_context>
chip_gen: v6e
topology: v6e:2x2x1
jax: 0.10.0
libtpu: 0.0.40
codegen_flags: <defaults>
</compile_context>

<pallas_src>
import math
import functools

import jax
import jax.numpy as jnp
from jax.experimental import pallas as pl
from jax.experimental.pallas import tpu as pltpu


PARAM_KEYS = (
    "emb_wT", "emb_b",
    "inproj_wT", "inproj_b", "outproj_wT", "outproj_b",
    "ln1_w", "ln1_b", "ln2_w", "ln2_b",
    "ff1_wT", "ff1_b", "ff2_wT", "ff2_b",
    "out_wT", "out_b",
)


# ----------------------------------------------------------------------------
# shared math (plain jnp -> usable both inside the kernel and as reference)
# ----------------------------------------------------------------------------
def _mm(x, w):
    """x @ w with operands cast to the weight dtype (bf16), f32 accumulation."""
    return jnp.dot(x.astype(w.dtype), w, preferred_element_type=jnp.float32)


def _layernorm(x, g, b, eps=1e-5):
    mu = jnp.mean(x, axis=-1, keepdims=True)
    xc = x - mu
    var = jnp.mean(xc * xc, axis=-1, keepdims=True)
    return xc * jax.lax.rsqrt(var + eps) * g + b


def _softmax_last(s, approx_recip):
    s = s - jnp.max(s, axis=-1, keepdims=True)
    p = jnp.exp(s)
    denom = jnp.sum(p, axis=-1, keepdims=True)
    if approx_recip:
        return p * pl.reciprocal(denom, approx=True)   # EUP slot, kernel only
    return p / denom


def _forward_tile(x_rows, pe_rows, p, *, num_heads, seq_len, approx_recip):
    """Forward for a tile of nb = rows/seq_len examples.

    x_rows : (nb*seq_len, 2F) rows in (example, time) row-major order
    pe_rows: (nb*seq_len, H) positional encoding, already tiled over examples
    returns: (nb, 2F) last-token readout
    """
    rows = x_rows.shape[0]
    nb = rows // seq_len
    H = p["emb_wT"].shape[1]
    hd = H // num_heads
    num_layers = p["inproj_wT"].shape[0]

    # embedding Linear(2F -> H) + positional encoding (f32 residual stream)
    h = _mm(x_rows, p["emb_wT"]) + p["emb_b"] + pe_rows            # (rows, H)

    for l in range(num_layers):
        # hoist per-layer parameter reads: one slice/broadcast per layer
        w_qkv = p["inproj_wT"][l]             # (H, 3H) -- q-scale pre-folded
        b_qkv = p["inproj_b"][l:l + 1, :]     # (1, 3H)
        w_out = p["outproj_wT"][l]            # (H, H)
        b_out = p["outproj_b"][l:l + 1, :]
        g1, be1 = p["ln1_w"][l:l + 1, :], p["ln1_b"][l:l + 1, :]
        g2, be2 = p["ln2_w"][l:l + 1, :], p["ln2_b"][l:l + 1, :]
        w_ff1, b_ff1 = p["ff1_wT"][l], p["ff1_b"][l:l + 1, :]
        w_ff2, b_ff2 = p["ff2_wT"][l], p["ff2_b"][l:l + 1, :]

        # self-attention: single QKV matmul, batched per-head einsums,
        # lane-concat, single out_proj matmul
        qkv = _mm(h, w_qkv) + b_qkv                                # (rows, 3H)
        heads = []
        for n in range(num_heads):
            q = qkv[:, n * hd:(n + 1) * hd].reshape(nb, seq_len, hd)
            k = qkv[:, H + n * hd:H + (n + 1) * hd].reshape(nb, seq_len, hd)
            v = qkv[:, 2 * H + n * hd:2 * H + (n + 1) * hd].reshape(nb, seq_len, hd)
            s = jnp.einsum("bqd,bkd->bqk", q, k,
                           preferred_element_type=jnp.float32)     # (nb, S, S)
            pr = _softmax_last(s, approx_recip)
            o = jnp.einsum("bqk,bkd->bqd", pr, v,
                           preferred_element_type=jnp.float32)     # (nb, S, hd)
            heads.append(o.reshape(rows, hd))
        ctx = jnp.concatenate(heads, axis=-1)                      # (rows, H)
        sa = _mm(ctx, w_out) + b_out

        # post-norm residuals + relu FFN (dropout = identity at inference)
        h = _layernorm(h + sa, g1, be1)
        ff = _mm(jnp.maximum(_mm(h, w_ff1) + b_ff1, 0.0), w_ff2) + b_ff2
        h = _layernorm(h + ff, g2, be2)

    # last-token readout for the whole tile: (nb, H) @ (H, 2F)
    last = h.reshape(nb, seq_len, H)[:, seq_len - 1, :]
    return _mm(last, p["out_wT"]) + p["out_b"]


# ----------------------------------------------------------------------------
# Pallas kernel: TB examples per grid step, everything resident in VMEM
# ----------------------------------------------------------------------------
def _kernel(num_heads, seq_len, *refs):
    src_ref, pe_ref = refs[0], refs[1]
    out_ref = refs[-1]
    p = {k: r[...] for k, r in zip(PARAM_KEYS, refs[2:-1])}
    out_ref[...] = _forward_tile(
        src_ref[...], pe_ref[...], p,
        num_heads=num_heads, seq_len=seq_len, approx_recip=True,
    ).astype(out_ref.dtype)


# ----------------------------------------------------------------------------
# host-side preparation
# ----------------------------------------------------------------------------
@functools.lru_cache(maxsize=8)
def positional_encoding(S, H):
    position = jnp.arange(S, dtype=jnp.float32)[:, None]
    div_term = jnp.exp(jnp.arange(0, H, 2, dtype=jnp.float32)
                       * (-math.log(10000.0) / H))
    pe = jnp.zeros((S, H), jnp.float32)
    pe = pe.at[:, 0::2].set(jnp.sin(position * div_term))
    pe = pe.at[:, 1::2].set(jnp.cos(position * div_term))
    return pe


def prepare_params(params, num_heads, compute_dtype=jnp.bfloat16):
    """Pre-transpose all weights (no '.T' in the kernel), fold the
    1/sqrt(head_dim) attention scale into the q projection, and cast matmul
    weights to the MXU compute dtype. Biases / LayerNorm params stay f32."""
    H = params["emb_w"].shape[0]
    hd = H // num_heads
    scale = 1.0 / math.sqrt(hd)
    qscale = jnp.concatenate(
        [jnp.full((H,), scale, jnp.float32), jnp.ones((2 * H,), jnp.float32)])
    inproj_w = params["inproj_w"] * qscale[None, :, None]
    inproj_b = params["inproj_b"] * qscale[None, :]
    cd, f32 = compute_dtype, jnp.float32
    return {
        "emb_wT":     params["emb_w"].T.astype(cd),                       # (2F, H)
        "emb_b":      params["emb_b"].astype(f32),                        # (1, H)
        "inproj_wT":  inproj_w.transpose(0, 2, 1).astype(cd),             # (L, H, 3H)
        "inproj_b":   inproj_b.astype(f32),                               # (L, 3H)
        "outproj_wT": params["outproj_w"].transpose(0, 2, 1).astype(cd),  # (L, H, H)
        "outproj_b":  params["outproj_b"].astype(f32),
        "ln1_w":      params["ln1_w"].astype(f32),
        "ln1_b":      params["ln1_b"].astype(f32),
        "ln2_w":      params["ln2_w"].astype(f32),
        "ln2_b":      params["ln2_b"].astype(f32),
        "ff1_wT":     params["ff1_w"].transpose(0, 2, 1).astype(cd),      # (L, H, FF)
        "ff1_b":      params["ff1_b"].astype(f32),
        "ff2_wT":     params["ff2_w"].transpose(0, 2, 1).astype(cd),      # (L, FF, H)
        "ff2_b":      params["ff2_b"].astype(f32),
        "out_wT":     params["out_w"].T.astype(cd),                       # (H, 2F)
        "out_b":      params["out_b"].astype(f32),                        # (1, 2F)
    }


def _full_spec(a):
    nd = a.ndim
    return pl.BlockSpec(a.shape, lambda b, _nd=nd: (0,) * _nd)


def complex_spectrogram_transformer(src, prep, num_heads=4, target_rows=256):
    """src: (B, S, 2*input_size) f32. prep: prepare_params(...) output."""
    B, S, F2 = src.shape
    H = prep["emb_wT"].shape[1]

    # batch tile: TB examples per grid step so matmul M ~= target_rows
    # (128 fills a v5e MXU pass; 256 matches the v6e/v7x 256-wide MXU).
    TB = max(1, min(B, max(1, target_rows // S)))
    B_pad = ((B + TB - 1) // TB) * TB
    if B_pad != TB and ((TB * S) % 8 != 0 or TB % 8 != 0):
        TB, B_pad = B, B    # fallback: one step, full-array blocks (always legal)
    if B_pad != B:
        src = jnp.concatenate(
            [src, jnp.zeros((B_pad - B, S, F2), src.dtype)], axis=0)
    src_rows = src.reshape(B_pad * S, F2)          # (rows, 2F), (example, time) major

    pe_rows = jnp.tile(positional_encoding(S, H), (TB, 1))        # (TB*S, H)

    param_list = [prep[k] for k in PARAM_KEYS]
    in_specs = ([pl.BlockSpec((TB * S, F2), lambda b: (b, 0)),
                 _full_spec(pe_rows)]
                + [_full_spec(a) for a in param_list])
    out_specs = pl.BlockSpec((TB, F2), lambda b: (b, 0))

    # explicit VMEM budget: resident params + double-buffered src/out tiles,
    # with headroom, clamped under the v7x 64 MiB/TC physical budget.
    resident = sum(int(a.size) * a.dtype.itemsize for a in param_list)
    tiles = (TB * S * F2 + TB * F2 + TB * S * H) * 4
    vmem_limit = int(min(48 * 2 ** 20, max(32 * 2 ** 20, 4 * (resident + 2 * tiles))))

    kern = functools.partial(_kernel, num_heads, S)
    out = pl.pallas_call(
        kern,
        out_shape=jax.ShapeDtypeStruct((B_pad, F2), jnp.float32),
        grid=(B_pad // TB,),
        in_specs=in_specs,
        out_specs=out_specs,
        compiler_params=pltpu.CompilerParams(
            dimension_semantics=("parallel",),   # v7x: both TCs share the grid
            vmem_limit_bytes=vmem_limit),
    )(src_rows, pe_rows, *param_list)
    return out[:B]


# ----------------------------------------------------------------------------
# pure-JAX reference (same math / same prepared params, no Pallas)
# ----------------------------------------------------------------------------
def ref_forward(src, prep, num_heads):
    B, S, F2 = src.shape
    H = prep["emb_wT"].shape[1]
    pe_rows = jnp.tile(positional_encoding(S, H), (B, 1))
    return _forward_tile(src.reshape(B * S, F2), pe_rows, prep,
                         num_heads=num_heads, seq_len=S, approx_recip=False)


# ----------------------------------------------------------------------------
# deterministic parameter init (synthetic; shapes match the nn.Module)
# ----------------------------------------------------------------------------
def init_params(key, f2, h, ff, L):
    ks = jax.random.split(key, 12)

    def w(k, shape, scale=0.05):
        return (scale * jax.random.normal(k, shape)).astype(jnp.float32)

    return {
        "emb_w":     w(ks[0], (h, f2)),          # nn.Linear(2F, H).weight
        "emb_b":     w(ks[1], (1, h)),
        "inproj_w":  w(ks[2], (L, 3 * h, h)),    # MHA in_proj_weight per layer
        "inproj_b":  w(ks[3], (L, 3 * h)),
        "outproj_w": w(ks[4], (L, h, h)),        # MHA out_proj per layer
        "outproj_b": w(ks[5], (L, h)),
        "ln1_w":     jnp.ones((L, h), jnp.float32),
        "ln1_b":     jnp.zeros((L, h), jnp.float32),
        "ln2_w":     jnp.ones((L, h), jnp.float32),
        "ln2_b":     jnp.zeros((L, h), jnp.float32),
        "ff1_w":     w(ks[6], (L, ff, h)),       # linear1 (H -> 2H)
        "ff1_b":     w(ks[7], (L, ff)),
        "ff2_w":     w(ks[8], (L, h, ff)),       # linear2 (2H -> H)
        "ff2_b":     w(ks[9], (L, h)),
        "out_w":     w(ks[10], (f2, h)),         # nn.Linear(H, 2F).weight
        "out_b":     w(ks[11], (1, f2)),
    }


if __name__ == "__main__":
    # small shapes: batch=2, seq=8, input_size=16 -> features=32, hidden=32,
    # num_heads=4 (head_dim=8), num_layers=2, dim_feedforward=64
    B, S, INPUT_SIZE, HIDDEN, NUM_HEADS, NUM_LAYERS = 2, 8, 16, 32, 4, 2
    F2 = 2 * INPUT_SIZE
    FF = 2 * HIDDEN

    key = jax.random.PRNGKey(0)
    k_src, k_par = jax.random.split(key)
    src = jax.random.normal(k_src, (B, S, F2), jnp.float32)
    params = init_params(k_par, F2, HIDDEN, FF, NUM_LAYERS)

    prep = prepare_params(params, NUM_HEADS)     # one-time host-side weight prep

    out = complex_spectrogram_transformer(src, prep, num_heads=NUM_HEADS)
    out = jax.block_until_ready(out)

    ref = ref_forward(src, prep, NUM_HEADS)

    assert out.shape == (B, F2), out.shape
    assert bool(jnp.all(jnp.isfinite(out)))
    # tolerance accounts for the approx-reciprocal softmax inside the kernel
    assert bool(jnp.allclose(out, ref, atol=2e-3, rtol=2e-3)), \
        float(jnp.max(jnp.abs(out - ref)))

    print("KERNEL_OK")
</pallas_src>

<mosaic_0001>
module attributes {stable_mosaic.version = 11 : i64} {
  func.func @_kernel(%arg0: i32, %arg1: memref<16x32xf32, #tpu.memory_space<vmem>>, %arg2: memref<16x32xf32, #tpu.memory_space<vmem>>, %arg3: memref<32x32xbf16, #tpu.memory_space<vmem>>, %arg4: memref<1x32xf32, #tpu.memory_space<vmem>>, %arg5: memref<2x32x96xbf16, #tpu.memory_space<vmem>>, %arg6: memref<2x96xf32, #tpu.memory_space<vmem>>, %arg7: memref<2x32x32xbf16, #tpu.memory_space<vmem>>, %arg8: memref<2x32xf32, #tpu.memory_space<vmem>>, %arg9: memref<2x32xf32, #tpu.memory_space<vmem>>, %arg10: memref<2x32xf32, #tpu.memory_space<vmem>>, %arg11: memref<2x32xf32, #tpu.memory_space<vmem>>, %arg12: memref<2x32xf32, #tpu.memory_space<vmem>>, %arg13: memref<2x32x64xbf16, #tpu.memory_space<vmem>>, %arg14: memref<2x64xf32, #tpu.memory_space<vmem>>, %arg15: memref<2x64x32xbf16, #tpu.memory_space<vmem>>, %arg16: memref<2x32xf32, #tpu.memory_space<vmem>>, %arg17: memref<32x32xbf16, #tpu.memory_space<vmem>>, %arg18: memref<1x32xf32, #tpu.memory_space<vmem>>, %arg19: memref<2x32xf32, #tpu.memory_space<vmem>>) attributes {dimension_semantics = [#tpu.dimension_semantics<parallel>], iteration_bounds = array<i64: 1>, scalar_prefetch = 0 : i64, scratch_operands = 0 : i64, tpu.core_type = #tpu.core_type<tc>, window_params = [{transform_indices = @transform_0, window_bounds = array<i64: 16, 32>}, {pipeline_mode = #tpu.pipeline_mode<synchronous>, transform_indices = @transform_1, window_bounds = array<i64: 16, 32>}, {pipeline_mode = #tpu.pipeline_mode<synchronous>, transform_indices = @transform_2, window_bounds = array<i64: 32, 32>}, {pipeline_mode = #tpu.pipeline_mode<synchronous>, transform_indices = @transform_3, window_bounds = array<i64: 1, 32>}, {pipeline_mode = #tpu.pipeline_mode<synchronous>, transform_indices = @transform_4, window_bounds = array<i64: 2, 32, 96>}, {pipeline_mode = #tpu.pipeline_mode<synchronous>, transform_indices = @transform_5, window_bounds = array<i64: 2, 96>}, {pipeline_mode = #tpu.pipeline_mode<synchronous>, transform_indices = @transform_6, window_bounds = array<i64: 2, 32, 32>}, {pipeline_mode = #tpu.pipeline_mode<synchronous>, transform_indices = @transform_7, window_bounds = array<i64: 2, 32>}, {pipeline_mode = #tpu.pipeline_mode<synchronous>, transform_indices = @transform_8, window_bounds = array<i64: 2, 32>}, {pipeline_mode = #tpu.pipeline_mode<synchronous>, transform_indices = @transform_9, window_bounds = array<i64: 2, 32>}, {pipeline_mode = #tpu.pipeline_mode<synchronous>, transform_indices = @transform_10, window_bounds = array<i64: 2, 32>}, {pipeline_mode = #tpu.pipeline_mode<synchronous>, transform_indices = @transform_11, window_bounds = array<i64: 2, 32>}, {pipeline_mode = #tpu.pipeline_mode<synchronous>, transform_indices = @transform_12, window_bounds = array<i64: 2, 32, 64>}, {pipeline_mode = #tpu.pipeline_mode<synchronous>, transform_indices = @transform_13, window_bounds = array<i64: 2, 64>}, {pipeline_mode = #tpu.pipeline_mode<synchronous>, transform_indices = @transform_14, window_bounds = array<i64: 2, 64, 32>}, {pipeline_mode = #tpu.pipeline_mode<synchronous>, transform_indices = @transform_15, window_bounds = array<i64: 2, 32>}, {pipeline_mode = #tpu.pipeline_mode<synchronous>, transform_indices = @transform_16, window_bounds = array<i64: 32, 32>}, {pipeline_mode = #tpu.pipeline_mode<synchronous>, transform_indices = @transform_17, window_bounds = array<i64: 1, 32>}, {transform_indices = @transform_18, window_bounds = array<i64: 2, 32>}]} {
    %c0 = arith.constant 0 : index
    %c0_0 = arith.constant 0 : index
    %0 = vector.load %arg3[%c0, %c0_0] : memref<32x32xbf16, #tpu.memory_space<vmem>>, vector<32x32xbf16>
    %c0_1 = arith.constant 0 : index
    %c0_2 = arith.constant 0 : index
    %1 = vector.load %arg4[%c0_1, %c0_2] : memref<1x32xf32, #tpu.memory_space<vmem>>, vector<1x32xf32>
    %c0_3 = arith.constant 0 : index
    %c0_4 = arith.constant 0 : index
    %c0_5 = arith.constant 0 : index
    %2 = vector.load %arg5[%c0_3, %c0_4, %c0_5] : memref<2x32x96xbf16, #tpu.memory_space<vmem>>, vector<2x32x96xbf16>
    %c0_6 = arith.constant 0 : index
    %c0_7 = arith.constant 0 : index
    %3 = vector.load %arg6[%c0_6, %c0_7] : memref<2x96xf32, #tpu.memory_space<vmem>>, vector<2x96xf32>
    %c0_8 = arith.constant 0 : index
    %c0_9 = arith.constant 0 : index
    %c0_10 = arith.constant 0 : index
    %4 = vector.load %arg7[%c0_8, %c0_9, %c0_10] : memref<2x32x32xbf16, #tpu.memory_space<vmem>>, vector<2x32x32xbf16>
    %c0_11 = arith.constant 0 : index
    %c0_12 = arith.constant 0 : index
    %5 = vector.load %arg8[%c0_11, %c0_12] : memref<2x32xf32, #tpu.memory_space<vmem>>, vector<2x32xf32>
    %c0_13 = arith.constant 0 : index
    %c0_14 = arith.constant 0 : index
    %6 = vector.load %arg9[%c0_13, %c0_14] : memref<2x32xf32, #tpu.memory_space<vmem>>, vector<2x32xf32>
    %c0_15 = arith.constant 0 : index
    %c0_16 = arith.constant 0 : index
    %7 = vector.load %arg10[%c0_15, %c0_16] : memref<2x32xf32, #tpu.memory_space<vmem>>, vector<2x32xf32>
    %c0_17 = arith.constant 0 : index
    %c0_18 = arith.constant 0 : index
    %8 = vector.load %arg11[%c0_17, %c0_18] : memref<2x32xf32, #tpu.memory_space<vmem>>, vector<2x32xf32>
    %c0_19 = arith.constant 0 : index
    %c0_20 = arith.constant 0 : index
    %9 = vector.load %arg12[%c0_19, %c0_20] : memref<2x32xf32, #tpu.memory_space<vmem>>, vector<2x32xf32>
    %c0_21 = arith.constant 0 : index
    %c0_22 = arith.constant 0 : index
    %c0_23 = arith.constant 0 : index
    %10 = vector.load %arg13[%c0_21, %c0_22, %c0_23] : memref<2x32x64xbf16, #tpu.memory_space<vmem>>, vector<2x32x64xbf16>
    %c0_24 = arith.constant 0 : index
    %c0_25 = arith.constant 0 : index
    %11 = vector.load %arg14[%c0_24, %c0_25] : memref<2x64xf32, #tpu.memory_space<vmem>>, vector<2x64xf32>
    %c0_26 = arith.constant 0 : index
    %c0_27 = arith.constant 0 : index
    %c0_28 = arith.constant 0 : index
    %12 = vector.load %arg15[%c0_26, %c0_27, %c0_28] : memref<2x64x32xbf16, #tpu.memory_space<vmem>>, vector<2x64x32xbf16>
    %c0_29 = arith.constant 0 : index
    %c0_30 = arith.constant 0 : index
    %13 = vector.load %arg16[%c0_29, %c0_30] : memref<2x32xf32, #tpu.memory_space<vmem>>, vector<2x32xf32>
    %c0_31 = arith.constant 0 : index
    %c0_32 = arith.constant 0 : index
    %14 = vector.load %arg17[%c0_31, %c0_32] : memref<32x32xbf16, #tpu.memory_space<vmem>>, vector<32x32xbf16>
    %c0_33 = arith.constant 0 : index
    %c0_34 = arith.constant 0 : index
    %15 = vector.load %arg18[%c0_33, %c0_34] : memref<1x32xf32, #tpu.memory_space<vmem>>, vector<1x32xf32>
    %c0_35 = arith.constant 0 : index
    %c0_36 = arith.constant 0 : index
    %16 = vector.load %arg1[%c0_35, %c0_36] : memref<16x32xf32, #tpu.memory_space<vmem>>, vector<16x32xf32>
    %c0_37 = arith.constant 0 : index
    %c0_38 = arith.constant 0 : index
    %17 = vector.load %arg2[%c0_37, %c0_38] : memref<16x32xf32, #tpu.memory_space<vmem>>, vector<16x32xf32>
    %18 = arith.truncf %16 : vector<16x32xf32> to vector<16x32xbf16>
    %cst = arith.constant dense<0.000000e+00> : vector<16x32xf32>
    %19 = tpu.matmul %18, %0, %cst {dimension_numbers = #tpu.dot_dimension_numbers<[1], [0], [0], [1], [0, 0, 1, 1], [], []>} : vector<16x32xbf16>, vector<32x32xbf16>, vector<16x32xf32> -> vector<16x32xf32>
    %20 = vector.broadcast %1 : vector<1x32xf32> to vector<16x32xf32>
    %21 = arith.addf %19, %20 : vector<16x32xf32>
    %22 = arith.addf %21, %17 : vector<16x32xf32>
    %23 = vector.extract_strided_slice %2 {offsets = [0, 0, 0], sizes = [1, 32, 96], strides = [1, 1, 1]} : vector<2x32x96xbf16> to vector<1x32x96xbf16>
    %24 = vector.shape_cast %23 : vector<1x32x96xbf16> to vector<32x96xbf16>
    %25 = vector.extract_strided_slice %3 {offsets = [0, 0], sizes = [1, 96], strides = [1, 1]} : vector<2x96xf32> to vector<1x96xf32>
    %26 = vector.extract_strided_slice %4 {offsets = [0, 0, 0], sizes = [1, 32, 32], strides = [1, 1, 1]} : vector<2x32x32xbf16> to vector<1x32x32xbf16>
    %27 = vector.shape_cast %26 : vector<1x32x32xbf16> to vector<32x32xbf16>
    %28 = vector.extract_strided_slice %5 {offsets = [0, 0], sizes = [1, 32], strides = [1, 1]} : vector<2x32xf32> to vector<1x32xf32>
    %29 = vector.extract_strided_slice %6 {offsets = [0, 0], sizes = [1, 32], strides = [1, 1]} : vector<2x32xf32> to vector<1x32xf32>
    %30 = vector.extract_strided_slice %7 {offsets = [0, 0], sizes = [1, 32], strides = [1, 1]} : vector<2x32xf32> to vector<1x32xf32>
    %31 = vector.extract_strided_slice %8 {offsets = [0, 0], sizes = [1, 32], strides = [1, 1]} : vector<2x32xf32> to vector<1x32xf32>
    %32 = vector.extract_strided_slice %9 {offsets = [0, 0], sizes = [1, 32], strides = [1, 1]} : vector<2x32xf32> to vector<1x32xf32>
    %33 = vector.extract_strided_slice %10 {offsets = [0, 0, 0], sizes = [1, 32, 64], strides = [1, 1, 1]} : vector<2x32x64xbf16> to vector<1x32x64xbf16>
    %34 = vector.shape_cast %33 : vector<1x32x64xbf16> to vector<32x64xbf16>
    %35 = vector.extract_strided_slice %11 {offsets = [0, 0], sizes = [1, 64], strides = [1, 1]} : vector<2x64xf32> to vector<1x64xf32>
    %36 = vector.extract_strided_slice %12 {offsets = [0, 0, 0], sizes = [1, 64, 32], strides = [1, 1, 1]} : vector<2x64x32xbf16> to vector<1x64x32xbf16>
    %37 = vector.shape_cast %36 : vector<1x64x32xbf16> to vector<64x32xbf16>
    %38 = vector.extract_strided_slice %13 {offsets = [0, 0], sizes = [1, 32], strides = [1, 1]} : vector<2x32xf32> to vector<1x32xf32>
    %39 = arith.truncf %22 : vector<16x32xf32> to vector<16x32xbf16>
    %cst_39 = arith.constant dense<0.000000e+00> : vector<16x96xf32>
    %40 = tpu.matmul %39, %24, %cst_39 {dimension_numbers = #tpu.dot_dimension_numbers<[1], [0], [0], [1], [0, 0, 1, 1], [], []>} : vector<16x32xbf16>, vector<32x96xbf16>, vector<16x96xf32> -> vector<16x96xf32>
    %41 = vector.broadcast %25 : vector<1x96xf32> to vector<16x96xf32>
    %42 = arith.addf %40, %41 : vector<16x96xf32>
    %43 = vector.extract_strided_slice %42 {offsets = [0, 0], sizes = [16, 8], strides = [1, 1]} : vector<16x96xf32> to vector<16x8xf32>
    %44 = vector.shape_cast %43 : vector<16x8xf32> to vector<2x8x8xf32>
    %45 = vector.extract_strided_slice %42 {offsets = [0, 32], sizes = [16, 8], strides = [1, 1]} : vector<16x96xf32> to vector<16x8xf32>
    %46 = vector.shape_cast %45 : vector<16x8xf32> to vector<2x8x8xf32>
    %47 = vector.extract_strided_slice %42 {offsets = [0, 64], sizes = [16, 8], strides = [1, 1]} : vector<16x96xf32> to vector<16x8xf32>
    %48 = vector.shape_cast %47 : vector<16x8xf32> to vector<2x8x8xf32>
    "tpu.trace_start"() <{level = 10 : i32, message = "bqd,bkd->bqk"}> : () -> ()
    %cst_40 = arith.constant dense<0.000000e+00> : vector<2x8x8xf32>
    %49 = tpu.matmul %44, %46, %cst_40 {dimension_numbers = #tpu.dot_dimension_numbers<[2], [2], [1], [1], [0, 0, 0, 1, 1, 1], [0], [0]>} : vector<2x8x8xf32>, vector<2x8x8xf32>, vector<2x8x8xf32> -> vector<2x8x8xf32>
    "tpu.trace_stop"() : () -> ()
    %cst_41 = arith.constant dense<0xFF800000> : vector<2x8xf32>
    %50 = vector.multi_reduction <maximumf>, %49, %cst_41 [2] : vector<2x8x8xf32> to vector<2x8xf32>
    %51 = vector.shape_cast %50 : vector<2x8xf32> to vector<2x8x1xf32>
    %52 = vector.broadcast %51 : vector<2x8x1xf32> to vector<2x8x8xf32>
    %53 = arith.subf %49, %52 : vector<2x8x8xf32>
    %54 = math.exp %53 : vector<2x8x8xf32>
    %cst_42 = arith.constant dense<0.000000e+00> : vector<2x8xf32>
    %55 = vector.multi_reduction <add>, %54, %cst_42 [2] : vector<2x8x8xf32> to vector<2x8xf32>
    %56 = vector.shape_cast %55 : vector<2x8xf32> to vector<2x8x1xf32>
    %57 = tpu.reciprocal %56 {approx = true} : vector<2x8x1xf32> -> vector<2x8x1xf32>
    %58 = vector.broadcast %57 : vector<2x8x1xf32> to vector<2x8x8xf32>
    %59 = arith.mulf %54, %58 : vector<2x8x8xf32>
    "tpu.trace_start"() <{level = 10 : i32, message = "bqk,bkd->bqd"}> : () -> ()
    %cst_43 = arith.constant dense<0.000000e+00> : vector<2x8x8xf32>
    %60 = tpu.matmul %59, %48, %cst_43 {dimension_numbers = #tpu.dot_dimension_numbers<[2], [1], [1], [2], [0, 0, 0, 1, 1, 2], [0], [0]>} : vector<2x8x8xf32>, vector<2x8x8xf32>, vector<2x8x8xf32> -> vector<2x8x8xf32>
    "tpu.trace_stop"() : () -> ()
    %61 = vector.shape_cast %60 : vector<2x8x8xf32> to vector<16x8xf32>
    %62 = vector.extract_strided_slice %42 {offsets = [0, 8], sizes = [16, 8], strides = [1, 1]} : vector<16x96xf32> to vector<16x8xf32>
    %63 = vector.shape_cast %62 : vector<16x8xf32> to vector<2x8x8xf32>
    %64 = vector.extract_strided_slice %42 {offsets = [0, 40], sizes = [16, 8], strides = [1, 1]} : vector<16x96xf32> to vector<16x8xf32>
    %65 = vector.shape_cast %64 : vector<16x8xf32> to vector<2x8x8xf32>
    %66 = vector.extract_strided_slice %42 {offsets = [0, 72], sizes = [16, 8], strides = [1, 1]} : vector<16x96xf32> to vector<16x8xf32>
    %67 = vector.shape_cast %66 : vector<16x8xf32> to vector<2x8x8xf32>
    "tpu.trace_start"() <{level = 10 : i32, message = "bqd,bkd->bqk"}> : () -> ()
    %cst_44 = arith.constant dense<0.000000e+00> : vector<2x8x8xf32>
    %68 = tpu.matmul %63, %65, %cst_44 {dimension_numbers = #tpu.dot_dimension_numbers<[2], [2], [1], [1], [0, 0, 0, 1, 1, 1], [0], [0]>} : vector<2x8x8xf32>, vector<2x8x8xf32>, vector<2x8x8xf32> -> vector<2x8x8xf32>
    "tpu.trace_stop"() : () -> ()
    %cst_45 = arith.constant dense<0xFF800000> : vector<2x8xf32>
    %69 = vector.multi_reduction <maximumf>, %68, %cst_45 [2] : vector<2x8x8xf32> to vector<2x8xf32>
    %70 = vector.shape_cast %69 : vector<2x8xf32> to vector<2x8x1xf32>
    %71 = vector.broadcast %70 : vector<2x8x1xf32> to vector<2x8x8xf32>
    %72 = arith.subf %68, %71 : vector<2x8x8xf32>
    %73 = math.exp %72 : vector<2x8x8xf32>
    %cst_46 = arith.constant dense<0.000000e+00> : vector<2x8xf32>
    %74 = vector.multi_reduction <add>, %73, %cst_46 [2] : vector<2x8x8xf32> to vector<2x8xf32>
    %75 = vector.shape_cast %74 : vector<2x8xf32> to vector<2x8x1xf32>
    %76 = tpu.reciprocal %75 {approx = true} : vector<2x8x1xf32> -> vector<2x8x1xf32>
    %77 = vector.broadcast %76 : vector<2x8x1xf32> to vector<2x8x8xf32>
    %78 = arith.mulf %73, %77 : vector<2x8x8xf32>
    "tpu.trace_start"() <{level = 10 : i32, message = "bqk,bkd->bqd"}> : () -> ()
    %cst_47 = arith.constant dense<0.000000e+00> : vector<2x8x8xf32>
    %79 = tpu.matmul %78, %67, %cst_47 {dimension_numbers = #tpu.dot_dimension_numbers<[2], [1], [1], [2], [0, 0, 0, 1, 1, 2], [0], [0]>} : vector<2x8x8xf32>, vector<2x8x8xf32>, vector<2x8x8xf32> -> vector<2x8x8xf32>
    "tpu.trace_stop"() : () -> ()
    %80 = vector.shape_cast %79 : vector<2x8x8xf32> to vector<16x8xf32>
    %81 = vector.extract_strided_slice %42 {offsets = [0, 16], sizes = [16, 8], strides = [1, 1]} : vector<16x96xf32> to vector<16x8xf32>
    %82 = vector.shape_cast %81 : vector<16x8xf32> to vector<2x8x8xf32>
    %83 = vector.extract_strided_slice %42 {offsets = [0, 48], sizes = [16, 8], strides = [1, 1]} : vector<16x96xf32> to vector<16x8xf32>
    %84 = vector.shape_cast %83 : vector<16x8xf32> to vector<2x8x8xf32>
    %85 = vector.extract_strided_slice %42 {offsets = [0, 80], sizes = [16, 8], strides = [1, 1]} : vector<16x96xf32> to vector<16x8xf32>
    %86 = vector.shape_cast %85 : vector<16x8xf32> to vector<2x8x8xf32>
    "tpu.trace_start"() <{level = 10 : i32, message = "bqd,bkd->bqk"}> : () -> ()
    %cst_48 = arith.constant dense<0.000000e+00> : vector<2x8x8xf32>
    %87 = tpu.matmul %82, %84, %cst_48 {dimension_numbers = #tpu.dot_dimension_numbers<[2], [2], [1], [1], [0, 0, 0, 1, 1, 1], [0], [0]>} : vector<2x8x8xf32>, vector<2x8x8xf32>, vector<2x8x8xf32> -> vector<2x8x8xf32>
    "tpu.trace_stop"() : () -> ()
    %cst_49 = arith.constant dense<0xFF800000> : vector<2x8xf32>
    %88 = vector.multi_reduction <maximumf>, %87, %cst_49 [2] : vector<2x8x8xf32> to vector<2x8xf32>
    %89 = vector.shape_cast %88 : vector<2x8xf32> to vector<2x8x1xf32>
    %90 = vector.broadcast %89 : vector<2x8x1xf32> to vector<2x8x8xf32>
    %91 = arith.subf %87, %90 : vector<2x8x8xf32>
    %92 = math.exp %91 : vector<2x8x8xf32>
    %cst_50 = arith.constant dense<0.000000e+00> : vector<2x8xf32>
    %93 = vector.multi_reduction <add>, %92, %cst_50 [2] : vector<2x8x8xf32> to vector<2x8xf32>
    %94 = vector.shape_cast %93 : vector<2x8xf32> to vector<2x8x1xf32>
    %95 = tpu.reciprocal %94 {approx = true} : vector<2x8x1xf32> -> vector<2x8x1xf32>
    %96 = vector.broadcast %95 : vector<2x8x1xf32> to vector<2x8x8xf32>
    %97 = arith.mulf %92, %96 : vector<2x8x8xf32>
    "tpu.trace_start"() <{level = 10 : i32, message = "bqk,bkd->bqd"}> : () -> ()
    %cst_51 = arith.constant dense<0.000000e+00> : vector<2x8x8xf32>
    %98 = tpu.matmul %97, %86, %cst_51 {dimension_numbers = #tpu.dot_dimension_numbers<[2], [1], [1], [2], [0, 0, 0, 1, 1, 2], [0], [0]>} : vector<2x8x8xf32>, vector<2x8x8xf32>, vector<2x8x8xf32> -> vector<2x8x8xf32>
    "tpu.trace_stop"() : () -> ()
    %99 = vector.shape_cast %98 : vector<2x8x8xf32> to vector<16x8xf32>
    %100 = vector.extract_strided_slice %42 {offsets = [0, 24], sizes = [16, 8], strides = [1, 1]} : vector<16x96xf32> to vector<16x8xf32>
    %101 = vector.shape_cast %100 : vector<16x8xf32> to vector<2x8x8xf32>
    %102 = vector.extract_strided_slice %42 {offsets = [0, 56], sizes = [16, 8], strides = [1, 1]} : vector<16x96xf32> to vector<16x8xf32>
    %103 = vector.shape_cast %102 : vector<16x8xf32> to vector<2x8x8xf32>
    %104 = vector.extract_strided_slice %42 {offsets = [0, 88], sizes = [16, 8], strides = [1, 1]} : vector<16x96xf32> to vector<16x8xf32>
    %105 = vector.shape_cast %104 : vector<16x8xf32> to vector<2x8x8xf32>
    "tpu.trace_start"() <{level = 10 : i32, message = "bqd,bkd->bqk"}> : () -> ()
    %cst_52 = arith.constant dense<0.000000e+00> : vector<2x8x8xf32>
    %106 = tpu.matmul %101, %103, %cst_52 {dimension_numbers = #tpu.dot_dimension_numbers<[2], [2], [1], [1], [0, 0, 0, 1, 1, 1], [0], [0]>} : vector<2x8x8xf32>, vector<2x8x8xf32>, vector<2x8x8xf32> -> vector<2x8x8xf32>
    "tpu.trace_stop"() : () -> ()
    %cst_53 = arith.constant dense<0xFF800000> : vector<2x8xf32>
    %107 = vector.multi_reduction <maximumf>, %106, %cst_53 [2] : vector<2x8x8xf32> to vector<2x8xf32>
    %108 = vector.shape_cast %107 : vector<2x8xf32> to vector<2x8x1xf32>
    %109 = vector.broadcast %108 : vector<2x8x1xf32> to vector<2x8x8xf32>
    %110 = arith.subf %106, %109 : vector<2x8x8xf32>
    %111 = math.exp %110 : vector<2x8x8xf32>
    %cst_54 = arith.constant dense<0.000000e+00> : vector<2x8xf32>
    %112 = vector.multi_reduction <add>, %111, %cst_54 [2] : vector<2x8x8xf32> to vector<2x8xf32>
    %113 = vector.shape_cast %112 : vector<2x8xf32> to vector<2x8x1xf32>
    %114 = tpu.reciprocal %113 {approx = true} : vector<2x8x1xf32> -> vector<2x8x1xf32>
    %115 = vector.broadcast %114 : vector<2x8x1xf32> to vector<2x8x8xf32>
    %116 = arith.mulf %111, %115 : vector<2x8x8xf32>
    "tpu.trace_start"() <{level = 10 : i32, message = "bqk,bkd->bqd"}> : () -> ()
    %cst_55 = arith.constant dense<0.000000e+00> : vector<2x8x8xf32>
    %117 = tpu.matmul %116, %105, %cst_55 {dimension_numbers = #tpu.dot_dimension_numbers<[2], [1], [1], [2], [0, 0, 0, 1, 1, 2], [0], [0]>} : vector<2x8x8xf32>, vector<2x8x8xf32>, vector<2x8x8xf32> -> vector<2x8x8xf32>
    "tpu.trace_stop"() : () -> ()
    %118 = vector.shape_cast %117 : vector<2x8x8xf32> to vector<16x8xf32>
    %119 = tpu.concatenate %61, %80, %99, %118 in 1 : vector<16x8xf32>, vector<16x8xf32>, vector<16x8xf32>, vector<16x8xf32> -> vector<16x32xf32>
    %120 = arith.truncf %119 : vector<16x32xf32> to vector<16x32xbf16>
    %cst_56 = arith.constant dense<0.000000e+00> : vector<16x32xf32>
    %121 = tpu.matmul %120, %27, %cst_56 {dimension_numbers = #tpu.dot_dimension_numbers<[1], [0], [0], [1], [0, 0, 1, 1], [], []>} : vector<16x32xbf16>, vector<32x32xbf16>, vector<16x32xf32> -> vector<16x32xf32>
    %122 = vector.broadcast %28 : vector<1x32xf32> to vector<16x32xf32>
    %123 = arith.addf %121, %122 : vector<16x32xf32>
    %124 = arith.addf %22, %123 : vector<16x32xf32>
    %cst_57 = arith.constant dense<0.000000e+00> : vector<16xf32>
    %125 = vector.multi_reduction <add>, %124, %cst_57 [1] : vector<16x32xf32> to vector<16xf32>
    %126 = vector.shape_cast %125 : vector<16xf32> to vector<16x1xf32>
    %cst_58 = arith.constant 3.200000e+01 : f32
    %127 = vector.broadcast %cst_58 : f32 to vector<16x1xf32>
    %128 = arith.divf %126, %127 : vector<16x1xf32>
    %129 = vector.broadcast %128 : vector<16x1xf32> to vector<16x32xf32>
    %130 = arith.subf %124, %129 : vector<16x32xf32>
    %131 = arith.mulf %130, %130 : vector<16x32xf32>
    %cst_59 = arith.constant dense<0.000000e+00> : vector<16xf32>
    %132 = vector.multi_reduction <add>, %131, %cst_59 [1] : vector<16x32xf32> to vector<16xf32>
    %133 = vector.shape_cast %132 : vector<16xf32> to vector<16x1xf32>
    %cst_60 = arith.constant 3.200000e+01 : f32
    %134 = vector.broadcast %cst_60 : f32 to vector<16x1xf32>
    %135 = arith.divf %133, %134 : vector<16x1xf32>
    %cst_61 = arith.constant 9.99999974E-6 : f32
    %136 = vector.broadcast %cst_61 : f32 to vector<16x1xf32>
    %137 = arith.addf %135, %136 : vector<16x1xf32>
    %138 = math.rsqrt %137 : vector<16x1xf32>
    %139 = vector.broadcast %138 : vector<16x1xf32> to vector<16x32xf32>
    %140 = arith.mulf %130, %139 : vector<16x32xf32>
    %141 = vector.broadcast %29 : vector<1x32xf32> to vector<16x32xf32>
    %142 = arith.mulf %140, %141 : vector<16x32xf32>
    %143 = vector.broadcast %30 : vector<1x32xf32> to vector<16x32xf32>
    %144 = arith.addf %142, %143 : vector<16x32xf32>
    %145 = arith.truncf %144 : vector<16x32xf32> to vector<16x32xbf16>
    %cst_62 = arith.constant dense<0.000000e+00> : vector<16x64xf32>
    %146 = tpu.matmul %145, %34, %cst_62 {dimension_numbers = #tpu.dot_dimension_numbers<[1], [0], [0], [1], [0, 0, 1, 1], [], []>} : vector<16x32xbf16>, vector<32x64xbf16>, vector<16x64xf32> -> vector<16x64xf32>
    %147 = vector.broadcast %35 : vector<1x64xf32> to vector<16x64xf32>
    %148 = arith.addf %146, %147 : vector<16x64xf32>
    %cst_63 = arith.constant 0.000000e+00 : f32
    %149 = vector.broadcast %cst_63 : f32 to vector<16x64xf32>
    %150 = arith.maximumf %148, %149 : vector<16x64xf32>
    %151 = arith.truncf %150 : vector<16x64xf32> to vector<16x64xbf16>
    %cst_64 = arith.constant dense<0.000000e+00> : vector<16x32xf32>
    %152 = tpu.matmul %151, %37, %cst_64 {dimension_numbers = #tpu.dot_dimension_numbers<[1], [0], [0], [1], [0, 0, 1, 1], [], []>} : vector<16x64xbf16>, vector<64x32xbf16>, vector<16x32xf32> -> vector<16x32xf32>
    %153 = vector.broadcast %38 : vector<1x32xf32> to vector<16x32xf32>
    %154 = arith.addf %152, %153 : vector<16x32xf32>
    %155 = arith.addf %144, %154 : vector<16x32xf32>
    %cst_65 = arith.constant dense<0.000000e+00> : vector<16xf32>
    %156 = vector.multi_reduction <add>, %155, %cst_65 [1] : vector<16x32xf32> to vector<16xf32>
    %157 = vector.shape_cast %156 : vector<16xf32> to vector<16x1xf32>
    %cst_66 = arith.constant 3.200000e+01 : f32
    %158 = vector.broadcast %cst_66 : f32 to vector<16x1xf32>
    %159 = arith.divf %157, %158 : vector<16x1xf32>
    %160 = vector.broadcast %159 : vector<16x1xf32> to vector<16x32xf32>
    %161 = arith.subf %155, %160 : vector<16x32xf32>
    %162 = arith.mulf %161, %161 : vector<16x32xf32>
    %cst_67 = arith.constant dense<0.000000e+00> : vector<16xf32>
    %163 = vector.multi_reduction <add>, %162, %cst_67 [1] : vector<16x32xf32> to vector<16xf32>
    %164 = vector.shape_cast %163 : vector<16xf32> to vector<16x1xf32>
    %cst_68 = arith.constant 3.200000e+01 : f32
    %165 = vector.broadcast %cst_68 : f32 to vector<16x1xf32>
    %166 = arith.divf %164, %165 : vector<16x1xf32>
    %cst_69 = arith.constant 9.99999974E-6 : f32
    %167 = vector.broadcast %cst_69 : f32 to vector<16x1xf32>
    %168 = arith.addf %166, %167 : vector<16x1xf32>
    %169 = math.rsqrt %168 : vector<16x1xf32>
    %170 = vector.broadcast %169 : vector<16x1xf32> to vector<16x32xf32>
    %171 = arith.mulf %161, %170 : vector<16x32xf32>
    %172 = vector.broadcast %31 : vector<1x32xf32> to vector<16x32xf32>
    %173 = arith.mulf %171, %172 : vector<16x32xf32>
    %174 = vector.broadcast %32 : vector<1x32xf32> to vector<16x32xf32>
    %175 = arith.addf %173, %174 : vector<16x32xf32>
    %176 = vector.extract_strided_slice %2 {offsets = [1, 0, 0], sizes = [1, 32, 96], strides = [1, 1, 1]} : vector<2x32x96xbf16> to vector<1x32x96xbf16>
    %177 = vector.shape_cast %176 : vector<1x32x96xbf16> to vector<32x96xbf16>
    %178 = vector.extract_strided_slice %3 {offsets = [1, 0], sizes = [1, 96], strides = [1, 1]} : vector<2x96xf32> to vector<1x96xf32>
    %179 = vector.extract_strided_slice %4 {offsets = [1, 0, 0], sizes = [1, 32, 32], strides = [1, 1, 1]} : vector<2x32x32xbf16> to vector<1x32x32xbf16>
    %180 = vector.shape_cast %179 : vector<1x32x32xbf16> to vector<32x32xbf16>
    %181 = vector.extract_strided_slice %5 {offsets = [1, 0], sizes = [1, 32], strides = [1, 1]} : vector<2x32xf32> to vector<1x32xf32>
    %182 = vector.extract_strided_slice %6 {offsets = [1, 0], sizes = [1, 32], strides = [1, 1]} : vector<2x32xf32> to vector<1x32xf32>
    %183 = vector.extract_strided_slice %7 {offsets = [1, 0], sizes = [1, 32], strides = [1, 1]} : vector<2x32xf32> to vector<1x32xf32>
    %184 = vector.extract_strided_slice %8 {offsets = [1, 0], sizes = [1, 32], strides = [1, 1]} : vector<2x32xf32> to vector<1x32xf32>
    %185 = vector.extract_strided_slice %9 {offsets = [1, 0], sizes = [1, 32], strides = [1, 1]} : vector<2x32xf32> to vector<1x32xf32>
    %186 = vector.extract_strided_slice %10 {offsets = [1, 0, 0], sizes = [1, 32, 64], strides = [1, 1, 1]} : vector<2x32x64xbf16> to vector<1x32x64xbf16>
    %187 = vector.shape_cast %186 : vector<1x32x64xbf16> to vector<32x64xbf16>
    %188 = vector.extract_strided_slice %11 {offsets = [1, 0], sizes = [1, 64], strides = [1, 1]} : vector<2x64xf32> to vector<1x64xf32>
    %189 = vector.extract_strided_slice %12 {offsets = [1, 0, 0], sizes = [1, 64, 32], strides = [1, 1, 1]} : vector<2x64x32xbf16> to vector<1x64x32xbf16>
    %190 = vector.shape_cast %189 : vector<1x64x32xbf16> to vector<64x32xbf16>
    %191 = vector.extract_strided_slice %13 {offsets = [1, 0], sizes = [1, 32], strides = [1, 1]} : vector<2x32xf32> to vector<1x32xf32>
    %192 = arith.truncf %175 : vector<16x32xf32> to vector<16x32xbf16>
    %cst_70 = arith.constant dense<0.000000e+00> : vector<16x96xf32>
    %193 = tpu.matmul %192, %177, %cst_70 {dimension_numbers = #tpu.dot_dimension_numbers<[1], [0], [0], [1], [0, 0, 1, 1], [], []>} : vector<16x32xbf16>, vector<32x96xbf16>, vector<16x96xf32> -> vector<16x96xf32>
    %194 = vector.broadcast %178 : vector<1x96xf32> to vector<16x96xf32>
    %195 = arith.addf %193, %194 : vector<16x96xf32>
    %196 = vector.extract_strided_slice %195 {offsets = [0, 0], sizes = [16, 8], strides = [1, 1]} : vector<16x96xf32> to vector<16x8xf32>
    %197 = vector.shape_cast %196 : vector<16x8xf32> to vector<2x8x8xf32>
    %198 = vector.extract_strided_slice %195 {offsets = [0, 32], sizes = [16, 8], strides = [1, 1]} : vector<16x96xf32> to vector<16x8xf32>
    %199 = vector.shape_cast %198 : vector<16x8xf32> to vector<2x8x8xf32>
    %200 = vector.extract_strided_slice %195 {offsets = [0, 64], sizes = [16, 8], strides = [1, 1]} : vector<16x96xf32> to vector<16x8xf32>
    %201 = vector.shape_cast %200 : vector<16x8xf32> to vector<2x8x8xf32>
    "tpu.trace_start"() <{level = 10 : i32, message = "bqd,bkd->bqk"}> : () -> ()
    %cst_71 = arith.constant dense<0.000000e+00> : vector<2x8x8xf32>
    %202 = tpu.matmul %197, %199, %cst_71 {dimension_numbers = #tpu.dot_dimension_numbers<[2], [2], [1], [1], [0, 0, 0, 1, 1, 1], [0], [0]>} : vector<2x8x8xf32>, vector<2x8x8xf32>, vector<2x8x8xf32> -> vector<2x8x8xf32>
    "tpu.trace_stop"() : () -> ()
    %cst_72 = arith.constant dense<0xFF800000> : vector<2x8xf32>
    %203 = vector.multi_reduction <maximumf>, %202, %cst_72 [2] : vector<2x8x8xf32> to vector<2x8xf32>
    %204 = vector.shape_cast %203 : vector<2x8xf32> to vector<2x8x1xf32>
    %205 = vector.broadcast %204 : vector<2x8x1xf32> to vector<2x8x8xf32>
    %206 = arith.subf %202, %205 : vector<2x8x8xf32>
    %207 = math.exp %206 : vector<2x8x8xf32>
    %cst_73 = arith.constant dense<0.000000e+00> : vector<2x8xf32>
    %208 = vector.multi_reduction <add>, %207, %cst_73 [2] : vector<2x8x8xf32> to vector<2x8xf32>
    %209 = vector.shape_cast %208 : vector<2x8xf32> to vector<2x8x1xf32>
    %210 = tpu.reciprocal %209 {approx = true} : vector<2x8x1xf32> -> vector<2x8x1xf32>
    %211 = vector.broadcast %210 : vector<2x8x1xf32> to vector<2x8x8xf32>
    %212 = arith.mulf %207, %211 : vector<2x8x8xf32>
    "tpu.trace_start"() <{level = 10 : i32, message = "bqk,bkd->bqd"}> : () -> ()
    %cst_74 = arith.constant dense<0.000000e+00> : vector<2x8x8xf32>
    %213 = tpu.matmul %212, %201, %cst_74 {dimension_numbers = #tpu.dot_dimension_numbers<[2], [1], [1], [2], [0, 0, 0, 1, 1, 2], [0], [0]>} : vector<2x8x8xf32>, vector<2x8x8xf32>, vector<2x8x8xf32> -> vector<2x8x8xf32>
    "tpu.trace_stop"() : () -> ()
    %214 = vector.shape_cast %213 : vector<2x8x8xf32> to vector<16x8xf32>
    %215 = vector.extract_strided_slice %195 {offsets = [0, 8], sizes = [16, 8], strides = [1, 1]} : vector<16x96xf32> to vector<16x8xf32>
    %216 = vector.shape_cast %215 : vector<16x8xf32> to vector<2x8x8xf32>
    %217 = vector.extract_strided_slice %195 {offsets = [0, 40], sizes = [16, 8], strides = [1, 1]} : vector<16x96xf32> to vector<16x8xf32>
    %218 = vector.shape_cast %217 : vector<16x8xf32> to vector<2x8x8xf32>
    %219 = vector.extract_strided_slice %195 {offsets = [0, 72], sizes = [16, 8], strides = [1, 1]} : vector<16x96xf32> to vector<16x8xf32>
    %220 = vector.shape_cast %219 : vector<16x8xf32> to vector<2x8x8xf32>
    "tpu.trace_start"() <{level = 10 : i32, message = "bqd,bkd->bqk"}> : () -> ()
    %cst_75 = arith.constant dense<0.000000e+00> : vector<2x8x8xf32>
    %221 = tpu.matmul %216, %218, %cst_75 {dimension_numbers = #tpu.dot_dimension_numbers<[2], [2], [1], [1], [0, 0, 0, 1, 1, 1], [0], [0]>} : vector<2x8x8xf32>, vector<2x8x8xf32>, vector<2x8x8xf32> -> vector<2x8x8xf32>
    "tpu.trace_stop"() : () -> ()
    %cst_76 = arith.constant dense<0xFF800000> : vector<2x8xf32>
    %222 = vector.multi_reduction <maximumf>, %221, %cst_76 [2] : vector<2x8x8xf32> to vector<2x8xf32>
    %223 = vector.shape_cast %222 : vector<2x8xf32> to vector<2x8x1xf32>
    %224 = vector.broadcast %223 : vector<2x8x1xf32> to vector<2x8x8xf32>
    %225 = arith.subf %221, %224 : vector<2x8x8xf32>
    %226 = math.exp %225 : vector<2x8x8xf32>
    %cst_77 = arith.constant dense<0.000000e+00> : vector<2x8xf32>
    %227 = vector.multi_reduction <add>, %226, %cst_77 [2] : vector<2x8x8xf32> to vector<2x8xf32>
    %228 = vector.shape_cast %227 : vector<2x8xf32> to vector<2x8x1xf32>
    %229 = tpu.reciprocal %228 {approx = true} : vector<2x8x1xf32> -> vector<2x8x1xf32>
    %230 = vector.broadcast %229 : vector<2x8x1xf32> to vector<2x8x8xf32>
    %231 = arith.mulf %226, %230 : vector<2x8x8xf32>
    "tpu.trace_start"() <{level = 10 : i32, message = "bqk,bkd->bqd"}> : () -> ()
    %cst_78 = arith.constant dense<0.000000e+00> : vector<2x8x8xf32>
    %232 = tpu.matmul %231, %220, %cst_78 {dimension_numbers = #tpu.dot_dimension_numbers<[2], [1], [1], [2], [0, 0, 0, 1, 1, 2], [0], [0]>} : vector<2x8x8xf32>, vector<2x8x8xf32>, vector<2x8x8xf32> -> vector<2x8x8xf32>
    "tpu.trace_stop"() : () -> ()
    %233 = vector.shape_cast %232 : vector<2x8x8xf32> to vector<16x8xf32>
    %234 = vector.extract_strided_slice %195 {offsets = [0, 16], sizes = [16, 8], strides = [1, 1]} : vector<16x96xf32> to vector<16x8xf32>
    %235 = vector.shape_cast %234 : vector<16x8xf32> to vector<2x8x8xf32>
    %236 = vector.extract_strided_slice %195 {offsets = [0, 48], sizes = [16, 8], strides = [1, 1]} : vector<16x96xf32> to vector<16x8xf32>
    %237 = vector.shape_cast %236 : vector<16x8xf32> to vector<2x8x8xf32>
    %238 = vector.extract_strided_slice %195 {offsets = [0, 80], sizes = [16, 8], strides = [1, 1]} : vector<16x96xf32> to vector<16x8xf32>
    %239 = vector.shape_cast %238 : vector<16x8xf32> to vector<2x8x8xf32>
    "tpu.trace_start"() <{level = 10 : i32, message = "bqd,bkd->bqk"}> : () -> ()
    %cst_79 = arith.constant dense<0.000000e+00> : vector<2x8x8xf32>
    %240 = tpu.matmul %235, %237, %cst_79 {dimension_numbers = #tpu.dot_dimension_numbers<[2], [2], [1], [1], [0, 0, 0, 1, 1, 1], [0], [0]>} : vector<2x8x8xf32>, vector<2x8x8xf32>, vector<2x8x8xf32> -> vector<2x8x8xf32>
    "tpu.trace_stop"() : () -> ()
    %cst_80 = arith.constant dense<0xFF800000> : vector<2x8xf32>
    %241 = vector.multi_reduction <maximumf>, %240, %cst_80 [2] : vector<2x8x8xf32> to vector<2x8xf32>
    %242 = vector.shape_cast %241 : vector<2x8xf32> to vector<2x8x1xf32>
    %243 = vector.broadcast %242 : vector<2x8x1xf32> to vector<2x8x8xf32>
    %244 = arith.subf %240, %243 : vector<2x8x8xf32>
    %245 = math.exp %244 : vector<2x8x8xf32>
    %cst_81 = arith.constant dense<0.000000e+00> : vector<2x8xf32>
    %246 = vector.multi_reduction <add>, %245, %cst_81 [2] : vector<2x8x8xf32> to vector<2x8xf32>
    %247 = vector.shape_cast %246 : vector<2x8xf32> to vector<2x8x1xf32>
    %248 = tpu.reciprocal %247 {approx = true} : vector<2x8x1xf32> -> vector<2x8x1xf32>
    %249 = vector.broadcast %248 : vector<2x8x1xf32> to vector<2x8x8xf32>
    %250 = arith.mulf %245, %249 : vector<2x8x8xf32>
    "tpu.trace_start"() <{level = 10 : i32, message = "bqk,bkd->bqd"}> : () -> ()
    %cst_82 = arith.constant dense<0.000000e+00> : vector<2x8x8xf32>
    %251 = tpu.matmul %250, %239, %cst_82 {dimension_numbers = #tpu.dot_dimension_numbers<[2], [1], [1], [2], [0, 0, 0, 1, 1, 2], [0], [0]>} : vector<2x8x8xf32>, vector<2x8x8xf32>, vector<2x8x8xf32> -> vector<2x8x8xf32>
    "tpu.trace_stop"() : () -> ()
    %252 = vector.shape_cast %251 : vector<2x8x8xf32> to vector<16x8xf32>
    %253 = vector.extract_strided_slice %195 {offsets = [0, 24], sizes = [16, 8], strides = [1, 1]} : vector<16x96xf32> to vector<16x8xf32>
    %254 = vector.shape_cast %253 : vector<16x8xf32> to vector<2x8x8xf32>
    %255 = vector.extract_strided_slice %195 {offsets = [0, 56], sizes = [16, 8], strides = [1, 1]} : vector<16x96xf32> to vector<16x8xf32>
    %256 = vector.shape_cast %255 : vector<16x8xf32> to vector<2x8x8xf32>
    %257 = vector.extract_strided_slice %195 {offsets = [0, 88], sizes = [16, 8], strides = [1, 1]} : vector<16x96xf32> to vector<16x8xf32>
    %258 = vector.shape_cast %257 : vector<16x8xf32> to vector<2x8x8xf32>
    "tpu.trace_start"() <{level = 10 : i32, message = "bqd,bkd->bqk"}> : () -> ()
    %cst_83 = arith.constant dense<0.000000e+00> : vector<2x8x8xf32>
    %259 = tpu.matmul %254, %256, %cst_83 {dimension_numbers = #tpu.dot_dimension_numbers<[2], [2], [1], [1], [0, 0, 0, 1, 1, 1], [0], [0]>} : vector<2x8x8xf32>, vector<2x8x8xf32>, vector<2x8x8xf32> -> vector<2x8x8xf32>
    "tpu.trace_stop"() : () -> ()
    %cst_84 = arith.constant dense<0xFF800000> : vector<2x8xf32>
    %260 = vector.multi_reduction <maximumf>, %259, %cst_84 [2] : vector<2x8x8xf32> to vector<2x8xf32>
    %261 = vector.shape_cast %260 : vector<2x8xf32> to vector<2x8x1xf32>
    %262 = vector.broadcast %261 : vector<2x8x1xf32> to vector<2x8x8xf32>
    %263 = arith.subf %259, %262 : vector<2x8x8xf32>
    %264 = math.exp %263 : vector<2x8x8xf32>
    %cst_85 = arith.constant dense<0.000000e+00> : vector<2x8xf32>
    %265 = vector.multi_reduction <add>, %264, %cst_85 [2] : vector<2x8x8xf32> to vector<2x8xf32>
    %266 = vector.shape_cast %265 : vector<2x8xf32> to vector<2x8x1xf32>
    %267 = tpu.reciprocal %266 {approx = true} : vector<2x8x1xf32> -> vector<2x8x1xf32>
    %268 = vector.broadcast %267 : vector<2x8x1xf32> to vector<2x8x8xf32>
    %269 = arith.mulf %264, %268 : vector<2x8x8xf32>
    "tpu.trace_start"() <{level = 10 : i32, message = "bqk,bkd->bqd"}> : () -> ()
    %cst_86 = arith.constant dense<0.000000e+00> : vector<2x8x8xf32>
    %270 = tpu.matmul %269, %258, %cst_86 {dimension_numbers = #tpu.dot_dimension_numbers<[2], [1], [1], [2], [0, 0, 0, 1, 1, 2], [0], [0]>} : vector<2x8x8xf32>, vector<2x8x8xf32>, vector<2x8x8xf32> -> vector<2x8x8xf32>
    "tpu.trace_stop"() : () -> ()
    %271 = vector.shape_cast %270 : vector<2x8x8xf32> to vector<16x8xf32>
    %272 = tpu.concatenate %214, %233, %252, %271 in 1 : vector<16x8xf32>, vector<16x8xf32>, vector<16x8xf32>, vector<16x8xf32> -> vector<16x32xf32>
    %273 = arith.truncf %272 : vector<16x32xf32> to vector<16x32xbf16>
    %cst_87 = arith.constant dense<0.000000e+00> : vector<16x32xf32>
    %274 = tpu.matmul %273, %180, %cst_87 {dimension_numbers = #tpu.dot_dimension_numbers<[1], [0], [0], [1], [0, 0, 1, 1], [], []>} : vector<16x32xbf16>, vector<32x32xbf16>, vector<16x32xf32> -> vector<16x32xf32>
    %275 = vector.broadcast %181 : vector<1x32xf32> to vector<16x32xf32>
    %276 = arith.addf %274, %275 : vector<16x32xf32>
    %277 = arith.addf %175, %276 : vector<16x32xf32>
    %cst_88 = arith.constant dense<0.000000e+00> : vector<16xf32>
    %278 = vector.multi_reduction <add>, %277, %cst_88 [1] : vector<16x32xf32> to vector<16xf32>
    %279 = vector.shape_cast %278 : vector<16xf32> to vector<16x1xf32>
    %cst_89 = arith.constant 3.200000e+01 : f32
    %280 = vector.broadcast %cst_89 : f32 to vector<16x1xf32>
    %281 = arith.divf %279, %280 : vector<16x1xf32>
    %282 = vector.broadcast %281 : vector<16x1xf32> to vector<16x32xf32>
    %283 = arith.subf %277, %282 : vector<16x32xf32>
    %284 = arith.mulf %283, %283 : vector<16x32xf32>
    %cst_90 = arith.constant dense<0.000000e+00> : vector<16xf32>
    %285 = vector.multi_reduction <add>, %284, %cst_90 [1] : vector<16x32xf32> to vector<16xf32>
    %286 = vector.shape_cast %285 : vector<16xf32> to vector<16x1xf32>
    %cst_91 = arith.constant 3.200000e+01 : f32
    %287 = vector.broadcast %cst_91 : f32 to vector<16x1xf32>
    %288 = arith.divf %286, %287 : vector<16x1xf32>
    %cst_92 = arith.constant 9.99999974E-6 : f32
    %289 = vector.broadcast %cst_92 : f32 to vector<16x1xf32>
    %290 = arith.addf %288, %289 : vector<16x1xf32>
    %291 = math.rsqrt %290 : vector<16x1xf32>
    %292 = vector.broadcast %291 : vector<16x1xf32> to vector<16x32xf32>
    %293 = arith.mulf %283, %292 : vector<16x32xf32>
    %294 = vector.broadcast %182 : vector<1x32xf32> to vector<16x32xf32>
    %295 = arith.mulf %293, %294 : vector<16x32xf32>
    %296 = vector.broadcast %183 : vector<1x32xf32> to vector<16x32xf32>
    %297 = arith.addf %295, %296 : vector<16x32xf32>
    %298 = arith.truncf %297 : vector<16x32xf32> to vector<16x32xbf16>
    %cst_93 = arith.constant dense<0.000000e+00> : vector<16x64xf32>
    %299 = tpu.matmul %298, %187, %cst_93 {dimension_numbers = #tpu.dot_dimension_numbers<[1], [0], [0], [1], [0, 0, 1, 1], [], []>} : vector<16x32xbf16>, vector<32x64xbf16>, vector<16x64xf32> -> vector<16x64xf32>
    %300 = vector.broadcast %188 : vector<1x64xf32> to vector<16x64xf32>
    %301 = arith.addf %299, %300 : vector<16x64xf32>
    %cst_94 = arith.constant 0.000000e+00 : f32
    %302 = vector.broadcast %cst_94 : f32 to vector<16x64xf32>
    %303 = arith.maximumf %301, %302 : vector<16x64xf32>
    %304 = arith.truncf %303 : vector<16x64xf32> to vector<16x64xbf16>
    %cst_95 = arith.constant dense<0.000000e+00> : vector<16x32xf32>
    %305 = tpu.matmul %304, %190, %cst_95 {dimension_numbers = #tpu.dot_dimension_numbers<[1], [0], [0], [1], [0, 0, 1, 1], [], []>} : vector<16x64xbf16>, vector<64x32xbf16>, vector<16x32xf32> -> vector<16x32xf32>
    %306 = vector.broadcast %191 : vector<1x32xf32> to vector<16x32xf32>
    %307 = arith.addf %305, %306 : vector<16x32xf32>
    %308 = arith.addf %297, %307 : vector<16x32xf32>
    %cst_96 = arith.constant dense<0.000000e+00> : vector<16xf32>
    %309 = vector.multi_reduction <add>, %308, %cst_96 [1] : vector<16x32xf32> to vector<16xf32>
    %310 = vector.shape_cast %309 : vector<16xf32> to vector<16x1xf32>
    %cst_97 = arith.constant 3.200000e+01 : f32
    %311 = vector.broadcast %cst_97 : f32 to vector<16x1xf32>
    %312 = arith.divf %310, %311 : vector<16x1xf32>
    %313 = vector.broadcast %312 : vector<16x1xf32> to vector<16x32xf32>
    %314 = arith.subf %308, %313 : vector<16x32xf32>
    %315 = arith.mulf %314, %314 : vector<16x32xf32>
    %cst_98 = arith.constant dense<0.000000e+00> : vector<16xf32>
    %316 = vector.multi_reduction <add>, %315, %cst_98 [1] : vector<16x32xf32> to vector<16xf32>
    %317 = vector.shape_cast %316 : vector<16xf32> to vector<16x1xf32>
    %cst_99 = arith.constant 3.200000e+01 : f32
    %318 = vector.broadcast %cst_99 : f32 to vector<16x1xf32>
    %319 = arith.divf %317, %318 : vector<16x1xf32>
    %cst_100 = arith.constant 9.99999974E-6 : f32
    %320 = vector.broadcast %cst_100 : f32 to vector<16x1xf32>
    %321 = arith.addf %319, %320 : vector<16x1xf32>
    %322 = math.rsqrt %321 : vector<16x1xf32>
    %323 = vector.broadcast %322 : vector<16x1xf32> to vector<16x32xf32>
    %324 = arith.mulf %314, %323 : vector<16x32xf32>
    %325 = vector.broadcast %184 : vector<1x32xf32> to vector<16x32xf32>
    %326 = arith.mulf %324, %325 : vector<16x32xf32>
    %327 = vector.broadcast %185 : vector<1x32xf32> to vector<16x32xf32>
    %328 = arith.addf %326, %327 : vector<16x32xf32>
    %329 = vector.shape_cast %328 : vector<16x32xf32> to vector<2x8x32xf32>
    %330 = vector.extract_strided_slice %329 {offsets = [0, 7, 0], sizes = [2, 1, 32], strides = [1, 1, 1]} : vector<2x8x32xf32> to vector<2x1x32xf32>
    %331 = vector.shape_cast %330 : vector<2x1x32xf32> to vector<2x32xf32>
    %332 = arith.truncf %331 : vector<2x32xf32> to vector<2x32xbf16>
    %cst_101 = arith.constant dense<0.000000e+00> : vector<2x32xf32>
    %333 = tpu.matmul %332, %14, %cst_101 {dimension_numbers = #tpu.dot_dimension_numbers<[1], [0], [0], [1], [0, 0, 1, 1], [], []>} : vector<2x32xbf16>, vector<32x32xbf16>, vector<2x32xf32> -> vector<2x32xf32>
    %334 = vector.broadcast %15 : vector<1x32xf32> to vector<2x32xf32>
    %335 = arith.addf %333, %334 : vector<2x32xf32>
    %c0_102 = arith.constant 0 : index
    %c0_103 = arith.constant 0 : index
    %336 = vector.load %arg19[%c0_102, %c0_103] : memref<2x32xf32, #tpu.memory_space<vmem>>, vector<2x32xf32>
    tpu.vector_store %arg19[%c0_102, %c0_103], %335 {strides = array<i32>} : memref<2x32xf32, #tpu.memory_space<vmem>>, vector<2x32xf32>,
    return
  }
  func.func @transform_0(%arg0: i32) -> (i32, i32) {
    %c0_i32 = arith.constant 0 : i32
    %c0_i32_0 = arith.constant 0 : i32
    return %arg0, %c0_i32 : i32, i32
  }
  func.func @transform_1(%arg0: i32) -> (i32, i32) {
    %c0_i32 = arith.constant 0 : i32
    %c0_i32_0 = arith.constant 0 : i32
    %c0_i32_1 = arith.constant 0 : i32
    return %c0_i32, %c0_i32_0 : i32, i32
  }
  func.func @transform_2(%arg0: i32) -> (i32, i32) {
    %c0_i32 = arith.constant 0 : i32
    %c0_i32_0 = arith.constant 0 : i32
    %c0_i32_1 = arith.constant 0 : i32
    return %c0_i32, %c0_i32_0 : i32, i32
  }
  func.func @transform_3(%arg0: i32) -> (i32, i32) {
    %c0_i32 = arith.constant 0 : i32
    %c0_i32_0 = arith.constant 0 : i32
    %c0_i32_1 = arith.constant 0 : i32
    return %c0_i32, %c0_i32_0 : i32, i32
  }
  func.func @transform_4(%arg0: i32) -> (i32, i32, i32) {
    %c0_i32 = arith.constant 0 : i32
    %c0_i32_0 = arith.constant 0 : i32
    %c0_i32_1 = arith.constant 0 : i32
    %c0_i32_2 = arith.constant 0 : i32
    return %c0_i32, %c0_i32_0, %c0_i32_1 : i32, i32, i32
  }
  func.func @transform_5(%arg0: i32) -> (i32, i32) {
    %c0_i32 = arith.constant 0 : i32
    %c0_i32_0 = arith.constant 0 : i32
    %c0_i32_1 = arith.constant 0 : i32
    return %c0_i32, %c0_i32_0 : i32, i32
  }
  func.func @transform_6(%arg0: i32) -> (i32, i32, i32) {
    %c0_i32 = arith.constant 0 : i32
    %c0_i32_0 = arith.constant 0 : i32
    %c0_i32_1 = arith.constant 0 : i32
    %c0_i32_2 = arith.constant 0 : i32
    return %c0_i32, %c0_i32_0, %c0_i32_1 : i32, i32, i32
  }
  func.func @transform_7(%arg0: i32) -> (i32, i32) {
    %c0_i32 = arith.constant 0 : i32
    %c0_i32_0 = arith.constant 0 : i32
    %c0_i32_1 = arith.constant 0 : i32
    return %c0_i32, %c0_i32_0 : i32, i32
  }
  func.func @transform_8(%arg0: i32) -> (i32, i32) {
    %c0_i32 = arith.constant 0 : i32
    %c0_i32_0 = arith.constant 0 : i32
    %c0_i32_1 = arith.constant 0 : i32
    return %c0_i32, %c0_i32_0 : i32, i32
  }
  func.func @transform_9(%arg0: i32) -> (i32, i32) {
    %c0_i32 = arith.constant 0 : i32
    %c0_i32_0 = arith.constant 0 : i32
    %c0_i32_1 = arith.constant 0 : i32
    return %c0_i32, %c0_i32_0 : i32, i32
  }
  func.func @transform_10(%arg0: i32) -> (i32, i32) {
    %c0_i32 = arith.constant 0 : i32
    %c0_i32_0 = arith.constant 0 : i32
    %c0_i32_1 = arith.constant 0 : i32
    return %c0_i32, %c0_i32_0 : i32, i32
  }
  func.func @transform_11(%arg0: i32) -> (i32, i32) {
    %c0_i32 = arith.constant 0 : i32
    %c0_i32_0 = arith.constant 0 : i32
    %c0_i32_1 = arith.constant 0 : i32
    return %c0_i32, %c0_i32_0 : i32, i32
  }
  func.func @transform_12(%arg0: i32) -> (i32, i32, i32) {
    %c0_i32 = arith.constant 0 : i32
    %c0_i32_0 = arith.constant 0 : i32
    %c0_i32_1 = arith.constant 0 : i32
    %c0_i32_2 = arith.constant 0 : i32
    return %c0_i32, %c0_i32_0, %c0_i32_1 : i32, i32, i32
  }
  func.func @transform_13(%arg0: i32) -> (i32, i32) {
    %c0_i32 = arith.constant 0 : i32
    %c0_i32_0 = arith.constant 0 : i32
    %c0_i32_1 = arith.constant 0 : i32
    return %c0_i32, %c0_i32_0 : i32, i32
  }
  func.func @transform_14(%arg0: i32) -> (i32, i32, i32) {
    %c0_i32 = arith.constant 0 : i32
    %c0_i32_0 = arith.constant 0 : i32
    %c0_i32_1 = arith.constant 0 : i32
    %c0_i32_2 = arith.constant 0 : i32
    return %c0_i32, %c0_i32_0, %c0_i32_1 : i32, i32, i32
  }
  func.func @transform_15(%arg0: i32) -> (i32, i32) {
    %c0_i32 = arith.constant 0 : i32
    %c0_i32_0 = arith.constant 0 : i32
    %c0_i32_1 = arith.constant 0 : i32
    return %c0_i32, %c0_i32_0 : i32, i32
  }
  func.func @transform_16(%arg0: i32) -> (i32, i32) {
    %c0_i32 = arith.constant 0 : i32
    %c0_i32_0 = arith.constant 0 : i32
    %c0_i32_1 = arith.constant 0 : i32
    return %c0_i32, %c0_i32_0 : i32, i32
  }
  func.func @transform_17(%arg0: i32) -> (i32, i32) {
    %c0_i32 = arith.constant 0 : i32
    %c0_i32_0 = arith.constant 0 : i32
    %c0_i32_1 = arith.constant 0 : i32
    return %c0_i32, %c0_i32_0 : i32, i32
  }
  func.func @transform_18(%arg0: i32) -> (i32, i32) {
    %c0_i32 = arith.constant 0 : i32
    %c0_i32_0 = arith.constant 0 : i32
    return %arg0, %c0_i32 : i32, i32
  }
}

</mosaic_0001>

<bundles_post_ra>
// kernel: tpu_custom_call.1
= control target key start
LH: loop header
LB: loop body
LE: loop exit
PB: predicated region body
PF: predicated region fallthrough
CT: control target
= control target key end

     0   :  { %s5245_s0 = inlined_call_operand.hbm [shape: f32[16,32], index: 0, kind: input, shape index: {}]   ;;  %s5246_s1 = inlined_call_operand.hbm [shape: f32[16,32], index: 1, kind: input, shape index: {}]   ;;  %s5247_s2 = inlined_call_operand.hbm [shape: bf16[32,32], index: 2, kind: input, shape index: {}]   ;;  %s5248_s3 = inlined_call_operand.hbm [shape: f32[1,32], index: 3, kind: input, shape index: {}]   ;;  %s5249_s4 = inlined_call_operand.vmem [shape: bf16[2,32,96], index: 4, kind: input, shape index: {}]   ;;  %s5250_s5 = inlined_call_operand.hbm [shape: f32[2,96], index: 5, kind: input, shape index: {}]   ;;  %s5251_s6 = inlined_call_operand.vmem [shape: bf16[2,32,32], index: 6, kind: input, shape index: {}]   ;;  %s5252_s7 = inlined_call_operand.hbm [shape: f32[2,32], index: 7, kind: input, shape index: {}]   ;;  %s5253_s8 = inlined_call_operand.hbm [shape: f32[2,32], index: 8, kind: input, shape index: {}]   ;;  %s5254_s9 = inlined_call_operand.hbm [shape: f32[2,32], index: 9, kind: input, shape index: {}]   ;;  %s5255_s10 = inlined_call_operand.vmem [shape: f32[2,32], index: 10, kind: input, shape index: {}]   ;;  %s5256_s11 = inlined_call_operand.vmem [shape: f32[2,32], index: 11, kind: input, shape index: {}]   ;;  %s5257_s12 = inlined_call_operand.vmem [shape: bf16[2,32,64], index: 12, kind: input, shape index: {}]   ;;  %s5258_s13 = inlined_call_operand.vmem [shape: f32[2,64], index: 13, kind: input, shape index: {}]   ;;  %s5259_s14 = inlined_call_operand.vmem [shape: bf16[2,64,32], index: 14, kind: input, shape index: {}]   ;;  %s5260_s15 = inlined_call_operand.vmem [shape: f32[2,32], index: 15, kind: input, shape index: {}]   ;;  %s5261_s16 = inlined_call_operand.vmem [shape: bf16[32,32], index: 16, kind: input, shape index: {}]   ;;  %s5262_s17 = inlined_call_operand.vmem [shape: f32[1,32], index: 17, kind: input, shape index: {}]   ;;  %s5263_s18 = inlined_call_operand.hbm [shape: f32[2,32], index: 18, kind: output, shape index: {}]  }
   0x1   :  { %5265 = sst [smem:[#allocation23_spill]] %s5245_s0 }
   0x2   :  { %5266 = sst [smem:[#allocation24_spill]] %s5246_s1 }
   0x3   :  { %5267 = sst [smem:[#allocation25_spill]] %s5247_s2 }
   0x4   :  { %23 = vsyncpa [#allocation3], 0 }
   0x5   :  { %24 = vsyncpa [#allocation6], 0 }
   0x6   :  { %25 = vsyncpa [#allocation9], 0 }
   0x7   :  { %26 = vsyncpa [#allocation12], 0 }
   0x8   :  { %27 = vsyncpa [#allocation15], 0 }
   0x9   :  { %28 = vsyncpa [#allocation4], 0  ;;  %s4541_s27 = smov [#allocation5]   ;;  %s4542_s29 = smov [#allocation8]  }
   0xa   :  { %s46_s28 = sshll.u32 %s4541_s27, 4  ;;  %s71_s30 = sshll.u32 %s4542_s29, 4  ;;  %s47_s28 = int_to_ptr.vmem [resolvable:$true] %s46_s28  ;;  %s72_s30 = int_to_ptr.vmem [resolvable:$true] %s71_s30 }
   0xb   :  { %s4357_s0 = scalar_lea.vmem %s47_s28, 256  ;;  %p4362_p1 = scmp.lt.s32.totalorder %s47_s28, %s47_s28 }
   0xc   :  { %p4358_p0 = scmp.ne.s32.totalorder %s47_s28, %s4357_s0  ;;  %p4363_p2 = scmp.lt.s32.totalorder %s4357_s0, %s4357_s0 }
   0xe   :  { %p4364_p3 = por %p4363_p2, %p4362_p1 }
  0x10   :  { %p4365_p4 = pnand %p4364_p3, %p4358_p0 }
  0x12   :  { %4368 = shalt.err (!%p4365_p4)
}
  0x13   :  { %s4543_s19 = smov 128   ;;  %s4544_s1 = smov 8  }
  0x14   :  { %s5268_s22 = sld [smem:[#allocation24_spill]]  ;;  %s4377_s2 = scalar_lea.vmem %s72_s30, 16 }
  0x15   :  { %p4378_p5 = scmp.ne.s32.totalorder %s72_s30, %s4377_s2  ;;  %s4381_s23 = scalar_lea.vmem %s72_s30, 32 }
  0x16   :  { %p4382_p6 = scmp.lt.s32.totalorder %s72_s30, %s72_s30  ;;  %p4383_p7 = scmp.lt.s32.totalorder %s4381_s23, %s4377_s2 }
  0x18   :  { %p4384_p8 = por %p4383_p7, %p4382_p6 }
  0x1a   :  { %52 = dma.hbm_to_vmem [thread:$0]  %s5268_s22, 256, %s47_s28, [#allocation6], %s4543_s19, %s4543_s19, %s4544_s1  }
  0x1b   :  { %p4385_p9 = pnand %p4384_p8, %p4378_p5 }
  0x1d   :  { %4388 = shalt.err (!%p4385_p9)
}
  0x1e   :  { %74 = dma.hbm_to_vmem [thread:$0]  %s5248_s3, 16, %s72_s30, [#allocation9]  }
  0x1f   :  { %s4545_s26 = smov [#allocation11]   ;;  %s4546_s29 = smov [#allocation2]  }
  0x20   :  { %s95_s27 = sshll.u32 %s4545_s26, 4  ;;  %s34_s0 = sshll.u32 %s4546_s29, 4  ;;  %s96_s27 = int_to_ptr.vmem [resolvable:$true] %s95_s27  ;;  %s35_s0 = int_to_ptr.vmem [resolvable:$true] %s34_s0 }
  0x21   :  { %s4397_s20 = scalar_lea.vmem %s96_s27, 32  ;;  %p4402_p11 = scmp.lt.s32.totalorder %s96_s27, %s96_s27 }
  0x22   :  { %p4398_p10 = scmp.ne.s32.totalorder %s96_s27, %s4397_s20  ;;  %p4403_p12 = scmp.lt.s32.totalorder %s4397_s20, %s4397_s20 }
  0x24   :  { %p4404_p13 = por %p4403_p12, %p4402_p11 }
  0x26   :  { %p4405_p0 = pnand %p4404_p13, %p4398_p10 }
  0x28   :  { %4408 = shalt.err (!%p4405_p0)
}
  0x29   :  { %98 = dma.hbm_to_vmem [thread:$0]  %s5252_s7, 32, %s96_s27, [#allocation12]  }
  0x2a   :  { %s4417_s22 = scalar_lea.vmem %s35_s0, 256  ;;  %p4422_p2 = scmp.lt.s32.totalorder %s35_s0, %s35_s0 }
  0x2b   :  { %p4418_p1 = scmp.ne.s32.totalorder %s35_s0, %s4417_s22  ;;  %p4423_p3 = scmp.lt.s32.totalorder %s4417_s22, %s4417_s22 }
  0x2d   :  { %p4424_p4 = por %p4423_p3, %p4422_p2 }
  0x2f   :  { %p4425_p5 = pnand %p4424_p4, %p4418_p1 }
  0x31   :  { %4428 = shalt.err (!%p4425_p5)
}
  0x32   :  { %s5269_s2 = sld [smem:[#allocation23_spill]]  ;;  %s4547_s23 = smov [#allocation7]  }
  0x33   :  { %s58_s24 = sshll.u32 %s4547_s23, 4  ;;  %s59_s24 = int_to_ptr.vmem [resolvable:$true] %s58_s24 }
  0x34   :  { %s4437_s25 = scalar_lea.vmem %s59_s24, 256  ;;  %p4442_p7 = scmp.lt.s32.totalorder %s59_s24, %s59_s24 }
  0x35   :  { %p4438_p6 = scmp.ne.s32.totalorder %s59_s24, %s4437_s25  ;;  %p4443_p8 = scmp.lt.s32.totalorder %s4437_s25, %s4437_s25 }
  0x37   :  { %p4444_p9 = por %p4443_p8, %p4442_p7 }
  0x38   :  { %40 = dma.hbm_to_vmem [thread:$0]  %s5269_s2, 256, %s35_s0, [#allocation3], %s4543_s19, %s4543_s19, %s4544_s1  }
  0x39   :  { %p4445_p10 = pnand %p4444_p9, %p4438_p6 }
  0x3b   :  { %4448 = shalt.err (!%p4445_p10)
}
  0x3c   :  { %s4548_s7 = smov 64   ;;  %s4549_s26 = smov 4  }
  0x3d   :  { %s5270_s20 = sld [smem:[#allocation25_spill]]  ;;  %s4550_s28 = smov [#allocation10]  }
  0x3e   :  { %s83_s19 = sshll.u32 %s4550_s28, 4  ;;  %s4551_s0 = smov [#allocation13]   ;;  %s84_s19 = int_to_ptr.vmem [resolvable:$true] %s83_s19 }
  0x3f   :  { %s105_s21 = sshll.u32 %s4551_s0, 4  ;;  %s4457_s22 = scalar_lea.vmem %s84_s19, 32  ;;  %s106_s21 = int_to_ptr.vmem [resolvable:$true] %s105_s21 }
  0x40   :  { %p4458_p11 = scmp.ne.s32.totalorder %s84_s19, %s4457_s22  ;;  %p4462_p12 = scmp.lt.s32.totalorder %s84_s19, %s84_s19 }
  0x41   :  { %p4463_p13 = scmp.lt.s32.totalorder %s4457_s22, %s4457_s22 }
  0x43   :  { %64 = dma.hbm_to_vmem [thread:$0]  %s5270_s20, 256, %s59_s24, [#allocation6], %s4548_s7, %s4548_s7, %s4549_s26  }
  0x44   :  { %p4464_p0 = por %p4463_p13, %p4462_p12 }
  0x46   :  { %p4465_p1 = pnand %p4464_p0, %p4458_p11 }
  0x48   :  { %4468 = shalt.err (!%p4465_p1)
}
  0x49   :  { %86 = dma.hbm_to_vmem [thread:$0]  %s5250_s5, 32, %s84_s19, [#allocation9]  }
  0x4a   :  { %s4477_s2 = scalar_lea.vmem %s106_s21, 32  ;;  %p4482_p3 = scmp.lt.s32.totalorder %s106_s21, %s106_s21 }
  0x4b   :  { %p4478_p2 = scmp.ne.s32.totalorder %s106_s21, %s4477_s2  ;;  %p4483_p4 = scmp.lt.s32.totalorder %s4477_s2, %s4477_s2 }
  0x4d   :  { %p4484_p5 = por %p4483_p4, %p4482_p3 }
  0x4f   :  { %p4485_p6 = pnand %p4484_p5, %p4478_p2 }
  0x51   :  { %4488 = shalt.err (!%p4485_p6)
}
  0x52   :  { %108 = dma.hbm_to_vmem [thread:$0]  %s5253_s8, 32, %s106_s21, [#allocation12]  }
  0x53   :  { %s4552_s25 = smov [#allocation14]  }
  0x54   :  { %s115_s26 = sshll.u32 %s4552_s25, 4  ;;  %s116_s26 = int_to_ptr.vmem [resolvable:$true] %s115_s26 }
  0x55   :  { %s4497_s27 = scalar_lea.vmem %s116_s26, 32  ;;  %p4502_p8 = scmp.lt.s32.totalorder %s116_s26, %s116_s26 }
  0x56   :  { %p4498_p7 = scmp.ne.s32.totalorder %s116_s26, %s4497_s27  ;;  %p4503_p9 = scmp.lt.s32.totalorder %s4497_s27, %s4497_s27 }
  0x58   :  { %p4504_p10 = por %p4503_p9, %p4502_p8 }
  0x5a   :  { %p4505_p11 = pnand %p4504_p10, %p4498_p7 }
  0x5c   :  { %4508 = shalt.err (!%p4505_p11)
}
  0x5d   :  { %118 = dma.hbm_to_vmem [thread:$0]  %s5254_s9, 32, %s116_s26, [#allocation15]  }
  0x5e   :  { %4529 = dma.done.wait [#allocation3], 256  }
  0x5f   :  { %4530 = vsyncadd [#allocation3], 4294967040 }
  0x60   :  { %4531 = dma.done.wait [#allocation6], 512  }
  0x61   :  { %4532 = vsyncadd [#allocation6], 4294966784 }
  0x62   :  { %4533 = dma.done.wait [#allocation9], 48  }
  0x63   :  { %4534 = vsyncadd [#allocation9], 4294967248 }
  0x64   :  { %4535 = dma.done.wait [#allocation12], 64  }
  0x65   :  { %4536 = vsyncadd [#allocation12], 4294967232 }
  0x66   :  { %4537 = dma.done.wait [#allocation15], 32  }
  0x67   :  { %4538 = vsyncadd [#allocation15], 4294967264  ;;  %v4553_v0 = vmov 0.0   ;;  %vm4554_vm0 = vmmov 0   ;;  %v4245_v1 = vld [vmem:[#allocation7 + $0x8] sm:$0xff]   ;;  %v4246_v2 = vld [vmem:[#allocation7] sm:$0xff]   ;;  %v289_v20 = vlaneseq }
  0x68   :  { %3940 = vmatprep.subr.bf16.mxu0 %v4553_v0  ;;  %3944 = vmatprep.mubr.msk.bf16.mxu0 %vm4554_vm0, %v4553_v0  ;;  %v218_v3 = vld [vmem:[#allocation2] sm:$0xff]  ;;  %v219_v4 = vld [vmem:[#allocation2 + $0x8] sm:$0xff]  ;;  %vm241_vm1 = vcmask 261120   ;;  %v3758_v8 = vld [vmem:[#allocation8] ss:$0 sm:$0xff]  ;;  %s4555_s19 = smov 96  }
  0x69   :  { %3948 = vmatprep.subr.bf16.mxu1 %v4553_v0  ;;  %3952 = vmatprep.mubr.msk.bf16.mxu1 %vm4554_vm0, %v4553_v0  ;;  %v222_v5 = vpack.c.bf16 %v219_v4, %v218_v3  ;;  %v4247_v6 = vld [vmem:[%s5249_s4 + $0x8] sm:$0xff]   ;;  %v4248_v7 = vld [vmem:[%s5249_s4] sm:$0xff]   ;;  %v220_v12 = vld [vmem:[#allocation5] sm:$0xff]  ;;  %v4723_v21 = vshrl.u32 %v289_v20, 7  ;;  %vm352_vm2 = vcmask 64512   ;;  %s4556_s0 = smov 88  }
  0x6a   :  { %3941 = vmatpush3.bf16.msra.mxu0 %v4245_v1  ;;  %3949 = vmatpush3.bf16.msra.mxu1 %v4247_v6  ;;  %v221_v13 = vld [vmem:[#allocation5 + $0x8] sm:$0xff]  ;;  %v4728_v23 = vld [vmem:[#allocation10] sm:$0x3]  ;;  %s4557_s21 = smov 120   ;;  %s4558_s22 = smov 56   ;;  %vm1694_vm3 = vcmask 130048  }
  0x6b   :  { %3942 = vmatprep.subr.bf16.mxu0 %v4553_v0  ;;  %3950 = vmatprep.subr.bf16.mxu1 %v4553_v0  ;;  %v4726_v22 = vsub.s32 0, %v4723_v21  ;;  %s4559_s3 = smov 80   ;;  %s4560_s30 = smov 112   ;;  %vm1697_vm4 = vcmask 195584   ;;  %vm1894_vm5 = vcmask 523264   ;;  %vm3679_vm6 = vcmask 1041409  }
  0x6c   :  { %s4561_s2 = smov 48   ;;  %s4562_s23 = smov 72   ;;  %vm3737_vm7 = vcmask 254976  }
  0x6d   :  { %v292_v24 = vrot.slane %v4728_v23, %v4726_v22  ;;  %s4563_s24 = smov 104   ;;  %s4564_s25 = smov 40  }
  0x6e   :  { %3943 = vmatpush3.bf16.msra.mxu0 %v4246_v2  ;;  %3951 = vmatpush3.bf16.msra.mxu1 %v4248_v7  ;;  %s4565_s26 = smov 16   ;;  %s5264_s9 = smov 24  }
  0x6f   :  { %3966 = vmatprep.subr.mxu0 %v4553_v0  ;;  %3956 = vmatprep.subr.mxu1 %v4553_v0  ;;  %s4567_s27 = smov [#allocation16]  }
  0x70   :  { %s3745_s5 = sshll.u32 %s4567_s27, 4  ;;  %s3746_s5 = int_to_ptr.vmem [resolvable:$true] %s3745_s5 }
  0x71   :  { %3945 = vmatmul.mubr.msk.bf16.vlgmr.msra.gmra.mxu0 %vm241_vm1, %v222_v5  ;;  %s4509_s29 = scalar_lea.vmem %s3746_s5, 32  ;;  %p4514_p13 = scmp.lt.s32.totalorder %s3746_s5, %s3746_s5 }
  0x72   :  { %3968 = vmatprep.mubr.msk.f32.mxu0 %vm4554_vm0, %v4553_v0  ;;  %p4510_p12 = scmp.ne.s32.totalorder %s3746_s5, %s4509_s29  ;;  %p4515_p0 = scmp.lt.s32.totalorder %s4509_s29, %s4509_s29 }
  0x74   :  { %p4516_p1 = por %p4515_p0, %p4514_p13 }
  0x76   :  { %p4517_p2 = pnand %p4516_p1, %p4510_p12 }
 0x131   :  { %v279_v9 = vpop.f32.mrf.mxu0 }
 0x132   :  { %v280_v11 = vadd.f32 %v3758_v8, %v279_v9 }
 0x133   :  { %v3946_v10 = vpop.f32.mrf.mxu0 }
 0x134   :  { %v4714_v17 = vadd.f32 %v280_v11, %v220_v12 }
 0x135   :  { %v282_v14 = vpop.f32.mrf.mxu0 }
 0x136   :  { %v283_v15 = vadd.f32 %v3758_v8, %v282_v14 }
 0x137   :  { %v3947_v16 = vpop.f32.mrf.mxu0 }
 0x138   :  { %v4716_v18 = vadd.f32 %v283_v15, %v221_v13 }
 0x13a   :  { %v288_v19 = vpack.c.bf16 %v4716_v18, %v4714_v17 }
 0x13c   :  { %3953 = vmatmul.mubr.msk.bf16.vlgmr.msra.gmra.mxu1 %vm241_vm1, %v288_v19 }
 0x13d   :  { %3958 = vmatprep.mubr.msk.f32.mxu1 %vm4554_vm0, %v4553_v0 }
 0x1fc   :  { %v342_v25 = vpop.f32.mrf.mxu1 }
 0x1fd   :  { %v4732_v26 = vadd.f32 %v342_v25, %v292_v24 }
 0x1fe   :  { %v3954_v27 = vpop.f32.mrf.mxu1 }
 0x1ff   :  { %350 = vrot.lane.b32.xlu0 %v4732_v26, %s4555_s19 }
 0x200   :  { %v345_v28 = vpop.f32.mrf.mxu1 }
 0x201   :  { %v4736_v29 = vadd.f32 %v345_v28, %v292_v24 }
 0x202   :  { %v3955_v30 = vpop.f32.mrf.mxu1 }
 0x203   :  { %428 = vrot.lane.b32.xlu0 %v4736_v29, %s4555_s19 }
 0x271   :  { %v351_v31 = vpop.permute.xlu0 %350 }
 0x272   :  { %3957 = vmatpush3.xpose.msk.msra.mxu1 %vm352_vm2, %v351_v31 }
 0x273   :  { %3961 = vmatprep.subr.mxu1 %v4553_v0 }
 0x275   :  { %3959 = vmatmul.mubr.msk.f32.vlgmr.msra.gmra.mxu1 %vm352_vm2, %v4732_v26  ;;  %v429_v32 = vpop.permute.xlu0 %428 }
 0x276   :  { %3962 = vmatpush3.xpose.msk.msra.mxu1 %vm352_vm2, %v429_v32  ;;  %3963 = vmatprep.mubr.msk.f32.mxu1 %vm4554_vm0, %v4553_v0 }
 0x277   :  { %3971 = vmatprep.subr.mxu1 %v4553_v0 }
 0x279   :  { %3964 = vmatmul.mubr.msk.f32.vlgmr.msra.gmra.mxu1 %vm352_vm2, %v4736_v29 }
 0x27a   :  { %3973 = vmatprep.mubr.msk.f32.mxu1 %vm4554_vm0, %v4553_v0 }
 0x335   :  { %v423_v33 = vpop.f32.mrf.mxu1 }
 0x336   :  { %v504_v34 = vsel %vm352_vm2, %v423_v33, -inf }
 0x337   :  { %505 = vmax.xlane.f32.xlu1 %v504_v34  ;;  %v3960_v35 = vpop.f32.mrf.mxu1 }
 0x339   :  { %v500_v36 = vpop.f32.mrf.mxu1 }
 0x33a   :  { %v507_v37 = vsel %vm352_vm2, %v500_v36, -inf }
 0x33b   :  { %508 = vmax.xlane.f32.xlu1 %v507_v37  ;;  %v3965_v38 = vpop.f32.mrf.mxu1 }
 0x34c   :  { %526 = vrot.lane.b32.xlu1 %v4732_v26, %s4548_s7 }
 0x350   :  { %602 = vrot.lane.b32.xlu1 %v4736_v29, %s4548_s7 }
 0x354   :  { %680 = vrot.lane.b32.xlu1 %v4732_v26, %s4556_s0 }
 0x358   :  { %758 = vrot.lane.b32.xlu1 %v4736_v29, %s4556_s0 }
 0x3c0   :  { %v506_v39 = vpop.xlane.xlu1 %505 }
 0x3c1   :  { %v510_v40 = vsub.f32 %v423_v33, %v506_v39 }
 0x3c3   :  { %v512_v41 = vmul.f32 1.442695, %v510_v40 }
 0x3c4   :  { %v509_v42 = vpop.xlane.xlu1 %508 }
 0x3c5   :  { %4269 = vpow2.f32 %v512_v41  ;;  %v511_v43 = vsub.f32 %v500_v36, %v509_v42 }
 0x3c7   :  { %v514_v44 = vmul.f32 1.442695, %v511_v43 }
 0x3c8   :  { %v527_v45 = vpop.permute.xlu1 %526 }
 0x3c9   :  { %4271 = vpow2.f32 %v514_v44  ;;  %3967 = vmatpush3.msra.mxu0 %v527_v45 }
 0x3ca   :  { %3976 = vmatprep.subr.mxu0 %v4553_v0 }
 0x3cc   :  { %v603_v46 = vpop.permute.xlu1 %602 }
 0x3cd   :  { %3972 = vmatpush3.msra.mxu1 %v603_v46 }
 0x3ce   :  { %3981 = vmatprep.subr.mxu1 %v4553_v0 }
 0x3d0   :  { %v681_v51 = vpop.permute.xlu1 %680 }
 0x3d2   :  { %v4270_v47 = vpop.eup %4269 }
 0x3d3   :  { %v516_v48 = vsel %vm352_vm2, %v4270_v47, 0.0 }
 0x3d4   :  { %517 = vadd.xlane.f32.xlu0 %v516_v48  ;;  %v759_v52 = vpop.permute.xlu1 %758 }
 0x3d6   :  { %v4272_v49 = vpop.eup %4271 }
 0x3d7   :  { %v519_v50 = vsel %vm352_vm2, %v4272_v49, 0.0 }
 0x3d8   :  { %520 = vadd.xlane.f32.xlu1 %v519_v50 }
 0x3e9   :  { %756 = vrot.lane.b32.xlu1 %v4736_v29, %s4557_s21 }
 0x3ea   :  { %678 = vrot.lane.b32.xlu0 %v4732_v26, %s4557_s21 }
 0x45d   :  { %v518_v53 = vpop.xlane.xlu0 %517 }
 0x45e   :  { %4273 = vrcp.f32 %v518_v53 }
 0x461   :  { %v521_v54 = vpop.xlane.xlu1 %520  ;;  %v679_v59 = vpop.permute.xlu0 %678 }
 0x462   :  { %4275 = vrcp.f32 %v521_v54 }
 0x465   :  { %v757_v60 = vpop.permute.xlu1 %756 }
 0x46b   :  { %v4274_v55 = vpop.eup %4273 }
 0x46c   :  { %v524_v56 = vmul.f32 %v4274_v55, %v4270_v47 }
 0x46e   :  { %3969 = vmatmul.mubr.msk.f32.vlgmr.msra.gmra.mxu0 %vm352_vm2, %v524_v56 }
 0x46f   :  { %v4276_v57 = vpop.eup %4275  ;;  %3977 = vmatpush3.xpose.msk.msra.mxu0 %vm352_vm2, %v681_v51  ;;  %3978 = vmatprep.mubr.msk.f32.mxu0 %vm4554_vm0, %v4553_v0 }
 0x470   :  { %v525_v58 = vmul.f32 %v4276_v57, %v4272_v49  ;;  %3986 = vmatprep.subr.mxu0 %v4553_v0 }
 0x472   :  { %3974 = vmatmul.mubr.msk.f32.vlgmr.msra.gmra.mxu1 %vm352_vm2, %v525_v58  ;;  %3979 = vmatmul.mubr.msk.f32.vlgmr.msra.gmra.mxu0 %vm352_vm2, %v679_v59 }
 0x473   :  { %3982 = vmatpush3.xpose.msk.msra.mxu1 %vm352_vm2, %v759_v52  ;;  %3983 = vmatprep.mubr.msk.f32.mxu1 %vm4554_vm0, %v4553_v0 }
 0x474   :  { %3991 = vmatprep.subr.mxu1 %v4553_v0  ;;  %3988 = vmatprep.mubr.msk.f32.mxu0 %vm4554_vm0, %v4553_v0 }
 0x476   :  { %3984 = vmatmul.mubr.msk.f32.vlgmr.msra.gmra.mxu1 %vm352_vm2, %v757_v60 }
 0x477   :  { %3993 = vmatprep.mubr.msk.f32.mxu1 %vm4554_vm0, %v4553_v0 }
 0x52e   :  { %v4786_v61 = vpop.f32.mrf.mxu0 }
 0x530   :  { %v3970_v62 = vpop.f32.mrf.mxu0 }
 0x532   :  { %v4788_v63 = vpop.f32.mrf.mxu1  ;;  %v752_v1 = vpop.f32.mrf.mxu0 }
 0x533   :  { %v834_v2 = vsel %vm352_vm2, %v752_v1, -inf }
 0x534   :  { %v3975_v3 = vpop.f32.mrf.mxu1  ;;  %835 = vmax.xlane.f32.xlu1 %v834_v2  ;;  %v3980_v4 = vpop.f32.mrf.mxu0 }
 0x536   :  { %v830_v5 = vpop.f32.mrf.mxu1 }
 0x537   :  { %v837_v6 = vsel %vm352_vm2, %v830_v5, -inf }
 0x538   :  { %838 = vmax.xlane.f32.xlu0 %v837_v6  ;;  %v3985_v7 = vpop.f32.mrf.mxu1 }
 0x545   :  { %856 = vrot.lane.b32.xlu1 %v4732_v26, %s4558_s22 }
 0x549   :  { %1010 = vrot.lane.b32.xlu1 %v4732_v26, %s4559_s3 }
 0x54d   :  { %1088 = vrot.lane.b32.xlu1 %v4736_v29, %s4559_s3 }
 0x54e   :  { %932 = vrot.lane.b32.xlu0 %v4736_v29, %s4558_s22 }
 0x552   :  { %1008 = vrot.lane.b32.xlu0 %v4732_v26, %s4560_s30 }
 0x5bd   :  { %v836_v8 = vpop.xlane.xlu1 %835 }
 0x5be   :  { %v840_v9 = vsub.f32 %v752_v1, %v836_v8 }
 0x5c0   :  { %v842_v10 = vmul.f32 1.442695, %v840_v9 }
 0x5c1   :  { %v839_v11 = vpop.xlane.xlu0 %838  ;;  %v857_v12 = vpop.permute.xlu1 %856 }
 0x5c2   :  { %4277 = vpow2.f32 %v842_v10  ;;  %v841_v13 = vsub.f32 %v830_v5, %v839_v11  ;;  %3987 = vmatpush3.msra.mxu0 %v857_v12 }
 0x5c3   :  { %3996 = vmatprep.subr.mxu0 %v4553_v0 }
 0x5c4   :  { %v844_v14 = vmul.f32 1.442695, %v841_v13 }
 0x5c5   :  { %v933_v15 = vpop.permute.xlu0 %932  ;;  %v1011_v25 = vpop.permute.xlu1 %1010 }
 0x5c6   :  { %4279 = vpow2.f32 %v844_v14  ;;  %3992 = vmatpush3.msra.mxu1 %v933_v15 }
 0x5c7   :  { %4001 = vmatprep.subr.mxu1 %v4553_v0 }
 0x5c9   :  { %v1089_v27 = vpop.permute.xlu1 %1088  ;;  %v1009_v35 = vpop.permute.xlu0 %1008 }
 0x5cf   :  { %v4278_v16 = vpop.eup %4277 }
 0x5d0   :  { %v846_v19 = vsel %vm352_vm2, %v4278_v16, 0.0 }
 0x5d1   :  { %847 = vadd.xlane.f32.xlu1 %v846_v19 }
 0x5d3   :  { %v4280_v20 = vpop.eup %4279 }
 0x5d4   :  { %v849_v24 = vsel %vm352_vm2, %v4280_v20, 0.0 }
 0x5d5   :  { %850 = vadd.xlane.f32.xlu1 %v849_v24 }
 0x5e6   :  { %1086 = vrot.lane.b32.xlu1 %v4736_v29, %s4560_s30 }
 0x65a   :  { %v848_v28 = vpop.xlane.xlu1 %847 }
 0x65b   :  { %4281 = vrcp.f32 %v848_v28 }
 0x65e   :  { %v851_v30 = vpop.xlane.xlu1 %850 }
 0x65f   :  { %4283 = vrcp.f32 %v851_v30 }
 0x662   :  { %v1087_v36 = vpop.permute.xlu1 %1086 }
 0x668   :  { %v4282_v31 = vpop.eup %4281 }
 0x669   :  { %v854_v32 = vmul.f32 %v4282_v31, %v4278_v16 }
 0x66b   :  { %3989 = vmatmul.mubr.msk.f32.vlgmr.msra.gmra.mxu0 %vm352_vm2, %v854_v32 }
 0x66c   :  { %v4284_v33 = vpop.eup %4283  ;;  %3997 = vmatpush3.xpose.msk.msra.mxu0 %vm352_vm2, %v1011_v25  ;;  %3998 = vmatprep.mubr.msk.f32.mxu0 %vm4554_vm0, %v4553_v0 }
 0x66d   :  { %v855_v34 = vmul.f32 %v4284_v33, %v4280_v20  ;;  %4006 = vmatprep.subr.mxu0 %v4553_v0 }
 0x66f   :  { %3994 = vmatmul.mubr.msk.f32.vlgmr.msra.gmra.mxu1 %vm352_vm2, %v855_v34  ;;  %3999 = vmatmul.mubr.msk.f32.vlgmr.msra.gmra.mxu0 %vm352_vm2, %v1009_v35 }
 0x670   :  { %4002 = vmatpush3.xpose.msk.msra.mxu1 %vm352_vm2, %v1089_v27  ;;  %4003 = vmatprep.mubr.msk.f32.mxu1 %vm4554_vm0, %v4553_v0 }
 0x671   :  { %4011 = vmatprep.subr.mxu1 %v4553_v0  ;;  %4008 = vmatprep.mubr.msk.f32.mxu0 %vm4554_vm0, %v4553_v0 }
 0x673   :  { %4004 = vmatmul.mubr.msk.f32.vlgmr.msra.gmra.mxu1 %vm352_vm2, %v1087_v36 }
 0x674   :  { %4013 = vmatprep.mubr.msk.f32.mxu1 %vm4554_vm0, %v4553_v0 }
 0x72b   :  { %v4824_v37 = vpop.f32.mrf.mxu0 }
 0x72d   :  { %v3990_v38 = vpop.f32.mrf.mxu0 }
 0x72f   :  { %v4826_v39 = vpop.f32.mrf.mxu1  ;;  %v1082_v40 = vpop.f32.mrf.mxu0 }
 0x730   :  { %v4215_v41 = vpack.i.bf16 %v4826_v39, %v4824_v37  ;;  %v1164_v42 = vsel %vm352_vm2, %v1082_v40, -inf }
 0x731   :  { %v3995_v43 = vpop.f32.mrf.mxu1  ;;  %1165 = vmax.xlane.f32.xlu0 %v1164_v42  ;;  %v4000_v44 = vpop.f32.mrf.mxu0 }
 0x732   :  { %v4250_v44 = vld [vmem:[%s5251_s6] sm:$0xff]  }
 0x733   :  { %v1160_v45 = vpop.f32.mrf.mxu1 }
 0x734   :  { %v1167_v46 = vsel %vm352_vm2, %v1160_v45, -inf }
 0x735   :  { %1168 = vmax.xlane.f32.xlu1 %v1167_v46  ;;  %v4005_v47 = vpop.f32.mrf.mxu1 }
 0x746   :  { %1186 = vrot.lane.b32.xlu1 %v4732_v26, %s4561_s2 }
 0x74a   :  { %1340 = vrot.lane.b32.xlu1 %v4732_v26, %s4562_s23 }
 0x74e   :  { %1418 = vrot.lane.b32.xlu1 %v4736_v29, %s4562_s23 }
 0x752   :  { %1416 = vrot.lane.b32.xlu1 %v4736_v29, %s4563_s24 }
 0x7ba   :  { %v1166_v48 = vpop.xlane.xlu0 %1165 }
 0x7bb   :  { %v1170_v49 = vsub.f32 %v1082_v40, %v1166_v48 }
 0x7bd   :  { %v1172_v50 = vmul.f32 1.442695, %v1170_v49 }
 0x7be   :  { %v1169_v51 = vpop.xlane.xlu1 %1168 }
 0x7bf   :  { %4285 = vpow2.f32 %v1172_v50  ;;  %v1171_v52 = vsub.f32 %v1160_v45, %v1169_v51 }
 0x7c1   :  { %v1174_v53 = vmul.f32 1.442695, %v1171_v52 }
 0x7c2   :  { %v1187_v54 = vpop.permute.xlu1 %1186 }
 0x7c3   :  { %4287 = vpow2.f32 %v1174_v53  ;;  %4007 = vmatpush3.msra.mxu0 %v1187_v54 }
 0x7c4   :  { %4016 = vmatprep.subr.mxu0 %v4553_v0 }
 0x7c6   :  { %v1341_v1 = vpop.permute.xlu1 %1340 }
 0x7ca   :  { %v1419_v5 = vpop.permute.xlu1 %1418 }
 0x7cc   :  { %v4286_v55 = vpop.eup %4285 }
 0x7cd   :  { %v1176_v56 = vsel %vm352_vm2, %v4286_v55, 0.0 }
 0x7ce   :  { %1177 = vadd.xlane.f32.xlu0 %v1176_v56  ;;  %v1417_v8 = vpop.permute.xlu1 %1416 }
 0x7d0   :  { %v4288_v57 = vpop.eup %4287 }
 0x7d1   :  { %v1179_v58 = vsel %vm352_vm2, %v4288_v57, 0.0 }
 0x7d2   :  { %1180 = vadd.xlane.f32.xlu0 %v1179_v58 }
 0x7e8   :  { %1262 = vrot.lane.b32.xlu0 %v4736_v29, %s4561_s2 }
 0x7ec   :  { %1338 = vrot.lane.b32.xlu0 %v4732_v26, %s4563_s24 }
 0x857   :  { %v1178_v59 = vpop.xlane.xlu0 %1177 }
 0x858   :  { %4289 = vrcp.f32 %v1178_v59 }
 0x85b   :  { %v1181_v60 = vpop.xlane.xlu0 %1180 }
 0x85c   :  { %4291 = vrcp.f32 %v1181_v60 }
 0x85f   :  { %v1263_v62 = vpop.permute.xlu0 %1262 }
 0x860   :  { %4012 = vmatpush3.msra.mxu1 %v1263_v62 }
 0x861   :  { %4021 = vmatprep.subr.mxu1 %v4553_v0 }
 0x863   :  { %v1339_v7 = vpop.permute.xlu0 %1338 }
 0x865   :  { %v4290_v2 = vpop.eup %4289 }
 0x866   :  { %v1184_v3 = vmul.f32 %v4290_v2, %v4286_v55 }
 0x868   :  { %4009 = vmatmul.mubr.msk.f32.vlgmr.msra.gmra.mxu0 %vm352_vm2, %v1184_v3 }
 0x869   :  { %v4292_v4 = vpop.eup %4291  ;;  %4017 = vmatpush3.xpose.msk.msra.mxu0 %vm352_vm2, %v1341_v1  ;;  %4018 = vmatprep.mubr.msk.f32.mxu0 %vm4554_vm0, %v4553_v0 }
 0x86a   :  { %v1185_v6 = vmul.f32 %v4292_v4, %v4288_v57  ;;  %4026 = vmatprep.subr.mxu0 %v4553_v0 }
 0x86c   :  { %4014 = vmatmul.mubr.msk.f32.vlgmr.msra.gmra.mxu1 %vm352_vm2, %v1185_v6  ;;  %4019 = vmatmul.mubr.msk.f32.vlgmr.msra.gmra.mxu0 %vm352_vm2, %v1339_v7 }
 0x86d   :  { %4022 = vmatpush3.xpose.msk.msra.mxu1 %vm352_vm2, %v1419_v5  ;;  %4023 = vmatprep.mubr.msk.f32.mxu1 %vm4554_vm0, %v4553_v0 }
 0x86e   :  { %4031 = vmatprep.subr.mxu1 %v4553_v0  ;;  %4028 = vmatprep.mubr.msk.f32.mxu0 %vm4554_vm0, %v4553_v0 }
 0x870   :  { %4024 = vmatmul.mubr.msk.f32.vlgmr.msra.gmra.mxu1 %vm352_vm2, %v1417_v8 }
 0x871   :  { %4033 = vmatprep.mubr.msk.f32.mxu1 %vm4554_vm0, %v4553_v0 }
 0x928   :  { %v1258_v9 = vpop.f32.mrf.mxu0 }
 0x92a   :  { %v4010_v10 = vpop.f32.mrf.mxu0 }
 0x92c   :  { %v1334_v11 = vpop.f32.mrf.mxu1  ;;  %v1412_v12 = vpop.f32.mrf.mxu0 }
 0x92d   :  { %v1494_v13 = vsel %vm352_vm2, %v1412_v12, -inf  ;;  %v4220_v24 = vpack.i.bf16 %v1334_v11, %v1258_v9 }
 0x92e   :  { %v4015_v14 = vpop.f32.mrf.mxu1  ;;  %1495 = vmax.xlane.f32.xlu0 %v1494_v13  ;;  %v4020_v15 = vpop.f32.mrf.mxu0 }
 0x930   :  { %v1490_v16 = vpop.f32.mrf.mxu1 }
 0x931   :  { %v1497_v19 = vsel %vm352_vm2, %v1490_v16, -inf }
 0x932   :  { %1498 = vmax.xlane.f32.xlu1 %v1497_v19  ;;  %v4025_v20 = vpop.f32.mrf.mxu1 }
 0x943   :  { %1516 = vrot.lane.b32.xlu1 %v4732_v26, %s4564_s25 }
 0x947   :  { %4216 = vrot.lane.b32.xlu1 %v4215_v41, %s4544_s1 }
 0x94b   :  { %4221 = vrot.lane.b32.xlu1 %v4220_v24, %s4565_s26 }
 0x9b7   :  { %v1496_v25 = vpop.xlane.xlu0 %1495 }
 0x9b8   :  { %v1500_v27 = vsub.f32 %v1412_v12, %v1496_v25 }
 0x9ba   :  { %v1502_v28 = vmul.f32 1.442695, %v1500_v27 }
 0x9bb   :  { %v1499_v30 = vpop.xlane.xlu1 %1498 }
 0x9bc   :  { %4293 = vpow2.f32 %v1502_v28  ;;  %v1501_v31 = vsub.f32 %v1490_v16, %v1499_v30 }
 0x9be   :  { %v1504_v32 = vmul.f32 1.442695, %v1501_v31  ;;  %v4252_v31 = vld [vmem:[%s5257_s12] sm:$0xff]  }
 0x9bf   :  { %v1517_v33 = vpop.permute.xlu1 %1516 }
 0x9c0   :  { %4295 = vpow2.f32 %v1504_v32  ;;  %4027 = vmatpush3.msra.mxu0 %v1517_v33  ;;  %v4253_v32 = vld [vmem:[%s5259_s14 + $0x18] sm:$0xff]  }
 0x9c1   :  { %4036 = vmatprep.subr.bf16.mxu0 %v4553_v0 }
 0x9c3   :  { %v4217_v50 = vpop.permute.xlu1 %4216 }
 0x9c4   :  { %v4219_v52 = vunpack.i.h.bf16 %v4217_v50  ;;  %v4218_v53 = vunpack.i.l.bf16 %v4217_v50  ;;  %v4254_v50 = vld [vmem:[%s5259_s14 + $0x10] sm:$0xff]  }
 0x9c6   :  { %v1693_v57 = vsel %vm352_vm2, %v4788_v63, %v4219_v52  ;;  %v1692_v58 = vsel %vm352_vm2, %v4786_v61, %v4218_v53  ;;  %v4905_v63 = vld [vmem:[#allocation11] sm:$0x3]  ;;  %v4256_v52 = vld [vmem:[%s5259_s14] sm:$0xff]  }
 0x9c7   :  { %v4222_v51 = vpop.permute.xlu1 %4221  ;;  %v1704_v61 = vrot.slane %v4905_v63, %v4726_v22  ;;  %v4953_v53 = vld [vmem:[%s5258_s13] sm:$0x3] }
 0x9c8   :  { %v4224_v54 = vunpack.i.h.bf16 %v4222_v51  ;;  %v4223_v55 = vunpack.i.l.bf16 %v4222_v51  ;;  %v4255_v51 = vld [vmem:[%s5259_s14 + $0x8] sm:$0xff]  }
 0x9c9   :  { %v4294_v26 = vpop.eup %4293 }
 0x9ca   :  { %v1506_v34 = vsel %vm352_vm2, %v4294_v26, 0.0  ;;  %v1696_v62 = vsel %vm1694_vm3, %v1693_v57, %v4224_v54  ;;  %v1695_v1 = vsel %vm1694_vm3, %v1692_v58, %v4223_v55  ;;  %v1806_v54 = vrot.slane %v4953_v53, %v4726_v22 }
 0x9cb   :  { %1507 = vadd.xlane.f32.xlu0 %v1506_v34 }
 0x9cd   :  { %v4296_v35 = vpop.eup %4295 }
 0x9ce   :  { %v1509_v36 = vsel %vm352_vm2, %v4296_v35, 0.0 }
 0x9cf   :  { %1510 = vadd.xlane.f32.xlu0 %v1509_v36 }
 0x9e5   :  { %1592 = vrot.lane.b32.xlu0 %v4736_v29, %s4564_s25  ;;  %v4249_v29 = vld [vmem:[%s5251_s6 + $0x8] sm:$0xff]  }
 0xa54   :  { %v1508_v37 = vpop.xlane.xlu0 %1507 }
 0xa55   :  { %4297 = vrcp.f32 %v1508_v37 }
 0xa58   :  { %v1511_v38 = vpop.xlane.xlu0 %1510 }
 0xa59   :  { %4299 = vrcp.f32 %v1511_v38  ;;  %v4927_v38 = vld [vmem:[#allocation13] sm:$0x3] }
 0xa5c   :  { %v1593_v39 = vpop.permute.xlu0 %1592 }
 0xa5d   :  { %4032 = vmatpush3.msra.mxu1 %v1593_v39 }
 0xa5e   :  { %4044 = vmatprep.subr.bf16.mxu1 %v4553_v0 }
 0xa62   :  { %v4298_v40 = vpop.eup %4297 }
 0xa63   :  { %v1514_v41 = vmul.f32 %v4298_v40, %v4294_v26 }
 0xa65   :  { %4029 = vmatmul.mubr.msk.f32.vlgmr.msra.gmra.mxu0 %vm352_vm2, %v1514_v41  ;;  %v1793_v41 = vrot.slane %v4927_v38, %v4726_v22 }
 0xa66   :  { %v4300_v42 = vpop.eup %4299  ;;  %4040 = vmatprep.mubr.msk.bf16.mxu0 %vm4554_vm0, %v4553_v0  ;;  %4037 = vmatpush3.bf16.msra.mxu0 %v4249_v29 }
 0xa67   :  { %v1515_v43 = vmul.f32 %v4300_v42, %v4296_v35  ;;  %4038 = vmatprep.subr.bf16.mxu0 %v4553_v0  ;;  %v4931_v42 = vld [vmem:[#allocation14] sm:$0x3] }
 0xa69   :  { %4034 = vmatmul.mubr.msk.f32.vlgmr.msra.gmra.mxu1 %vm352_vm2, %v1515_v43 }
 0xa6a   :  { %4048 = vmatprep.mubr.msk.bf16.mxu1 %vm4554_vm0, %v4553_v0  ;;  %4039 = vmatpush3.bf16.msra.mxu0 %v4250_v44 }
 0xa6b   :  { %4052 = vmatprep.subr.bf16.mxu0 %v4553_v0 }
 0xb25   :  { %v1588_v45 = vpop.f32.mrf.mxu0 }
 0xb27   :  { %v4030_v46 = vpop.f32.mrf.mxu0 }
 0xb29   :  { %v1664_v47 = vpop.f32.mrf.mxu1 }
 0xb2a   :  { %v4225_v48 = vpack.i.bf16 %v1664_v47, %v1588_v45  ;;  %v1799_v45 = vrot.slane %v4931_v42, %v4726_v22 }
 0xb2b   :  { %v4035_v49 = vpop.f32.mrf.mxu1 }
 0xb2c   :  { %4226 = vrot.lane.b32.xlu0 %v4225_v48, %s5264_s9 }
 0xb9e   :  { %v4227_v56 = vpop.permute.xlu0 %4226 }
 0xb9f   :  { %v4229_v59 = vunpack.i.h.bf16 %v4227_v56  ;;  %v4228_v60 = vunpack.i.l.bf16 %v4227_v56 }
 0xba1   :  { %v1699_v2 = vsel %vm1697_vm4, %v1696_v62, %v4229_v59  ;;  %v1698_v3 = vsel %vm1697_vm4, %v1695_v1, %v4228_v60 }
 0xba2   :  { %v1700_v4 = vpack.c.bf16 %v1699_v2, %v1698_v3  ;;  %v4963_v3 = vld [vmem:[%s5260_s15] sm:$0x3] }
 0xba4   :  { %4041 = vmatmul.mubr.msk.bf16.vlgmr.msra.gmra.mxu0 %vm241_vm1, %v1700_v4  ;;  %v1869_v4 = vrot.slane %v4963_v3, %v4726_v22 }
 0xba5   :  { %4060 = vmatprep.mubr.msk.bf16.mxu0 %vm4554_vm0, %v4553_v0  ;;  %4053 = vmatpush3.bf16.msra.mxu0 %v4253_v32 }
 0xba6   :  { %4054 = vmatprep.subr.bf16.mxu0 %v4553_v0 }
 0xba9   :  { %4055 = vmatpush3.bf16.msra.mxu0 %v4254_v50  ;;  %v5003_v50 = vsub.s32 1, %v4723_v21 }
 0xbaa   :  { %4056 = vmatprep.subr.bf16.mxu0 %v4553_v0 }
 0xbad   :  { %4057 = vmatpush3.bf16.msra.mxu0 %v4255_v51  ;;  %v1983_v51 = vrot.slane %v4728_v23, %v5003_v50 }
 0xbae   :  { %4058 = vmatprep.subr.bf16.mxu0 %v4553_v0 }
 0xbb1   :  { %4059 = vmatpush3.bf16.msra.mxu0 %v4256_v52 }
 0xbb2   :  { %4082 = vmatprep.subr.mxu0 %v4553_v0 }
 0xc64   :  { %v1754_v5 = vpop.f32.mrf.mxu0 }
 0xc65   :  { %v1755_v6 = vadd.f32 %v1754_v5, %v1704_v61 }
 0xc66   :  { %v4042_v7 = vpop.f32.mrf.mxu0 }
 0xc67   :  { %v1761_v8 = vadd.f32 %v1755_v6, %v4714_v17 }
 0xc68   :  { %v1757_v9 = vpop.f32.mrf.mxu0 }
 0xc69   :  { %v1758_v10 = vadd.f32 %v1757_v9, %v1704_v61  ;;  %v1763_v11 = vsel %vm241_vm1, %v1761_v8, 0.0 }
 0xc6a   :  { %1764 = vadd.xlane.f32.xlu1 %v1763_v11  ;;  %v4043_v12 = vpop.f32.mrf.mxu0 }
 0xc6b   :  { %v1762_v13 = vadd.f32 %v1758_v10, %v4716_v18  ;;  %v4251_v18 = vld [vmem:[%s5257_s12 + $0x8] sm:$0xff]  }
 0xc6c   :  { %4045 = vmatpush3.bf16.msra.mxu1 %v4251_v18  ;;  %v4258_v18 = vld [vmem:[%s5249_s4 + $0x10] sm:$0xff]  }
 0xc6d   :  { %v1766_v14 = vsel %vm241_vm1, %v1762_v13, 0.0  ;;  %4046 = vmatprep.subr.bf16.mxu1 %v4553_v0 }
 0xc6e   :  { %1767 = vadd.xlane.f32.xlu0 %v1766_v14 }
 0xc70   :  { %4047 = vmatpush3.bf16.msra.mxu1 %v4252_v31 }
 0xc71   :  { %4064 = vmatprep.subr.bf16.mxu1 %v4553_v0 }
 0xcf3   :  { %v1765_v15 = vpop.xlane.xlu1 %1764 }
 0xcf4   :  { %v1770_v16 = vmul.f32 0.03125, %v1765_v15 }
 0xcf6   :  { %v1772_v19 = vsub.f32 %v1761_v8, %v1770_v16 }
 0xcf7   :  { %v1768_v20 = vpop.xlane.xlu0 %1767 }
 0xcf8   :  { %v1771_v24 = vmul.f32 0.03125, %v1768_v20  ;;  %v1774_v25 = vmul.f32 %v1772_v19, %v1772_v19 }
 0xcfa   :  { %v1773_v27 = vsub.f32 %v1762_v13, %v1771_v24  ;;  %v1776_v17 = vsel %vm241_vm1, %v1774_v25, 0.0 }
 0xcfb   :  { %1777 = vadd.xlane.f32.xlu0 %v1776_v17 }
 0xcfc   :  { %v1775_v28 = vmul.f32 %v1773_v27, %v1773_v27 }
 0xcfe   :  { %v1779_v30 = vsel %vm241_vm1, %v1775_v28, 0.0 }
 0xcff   :  { %1780 = vadd.xlane.f32.xlu1 %v1779_v30  ;;  %v4257_v30 = vld [vmem:[%s5249_s4 + $0x18] sm:$0xff]  }
 0xd84   :  { %v1778_v33 = vpop.xlane.xlu0 %1777 }
 0xd85   :  { %v1782_v26 = vmul.f32 0.03125, %v1778_v33 }
 0xd87   :  { %v1784_v34 = vadd.f32 1e-05, %v1782_v26 }
 0xd88   :  { %v1781_v35 = vpop.xlane.xlu1 %1780 }
 0xd89   :  { %4301 = vrsqrt.f32 %v1784_v34  ;;  %v1783_v36 = vmul.f32 0.03125, %v1781_v35 }
 0xd8b   :  { %v1785_v37 = vadd.f32 1e-05, %v1783_v36  ;;  %v4982_v36 = vld [vmem:[%s5255_s10] sm:$0x3] }
 0xd8d   :  { %4303 = vrsqrt.f32 %v1785_v37 }
 0xd96   :  { %v4302_v39 = vpop.eup %4301 }
 0xd97   :  { %v1788_v40 = vmul.f32 %v4302_v39, %v1772_v19 }
 0xd99   :  { %v1794_v44 = vmul.f32 %v1793_v41, %v1788_v40  ;;  %v1970_v40 = vrot.slane %v4982_v36, %v4726_v22 }
 0xd9a   :  { %v4304_v43 = vpop.eup %4303 }
 0xd9b   :  { %v1789_v29 = vmul.f32 %v4304_v43, %v1773_v27  ;;  %v1800_v47 = vadd.f32 %v1799_v45, %v1794_v44 }
 0xd9d   :  { %v1795_v46 = vmul.f32 %v1793_v41, %v1789_v29  ;;  %v4989_v41 = vld [vmem:[%s5256_s11] sm:$0x3] }
 0xd9f   :  { %v1801_v48 = vadd.f32 %v1799_v45, %v1795_v46  ;;  %v1976_v45 = vrot.slane %v4989_v41, %v4726_v22 }
 0xda1   :  { %v1802_v49 = vpack.c.bf16 %v1801_v48, %v1800_v47 }
 0xda3   :  { %4049 = vmatmul.mubr.msk.bf16.vlgmr.msra.gmra.mxu1 %vm241_vm1, %v1802_v49 }
 0xda4   :  { %4068 = vmatprep.mubr.msk.bf16.mxu1 %vm4554_vm0, %v4553_v0  ;;  %4065 = vmatpush3.bf16.msra.mxu1 %v4257_v30 }
 0xda5   :  { %4066 = vmatprep.subr.bf16.mxu1 %v4553_v0 }
 0xda8   :  { %4067 = vmatpush3.bf16.msra.mxu1 %v4258_v18 }
 0xda9   :  { %4072 = vmatprep.subr.mxu1 %v4553_v0 }
 0xe63   :  { %v1856_v55 = vpop.f32.mrf.mxu1 }
 0xe64   :  { %v1857_v57 = vadd.f32 %v1856_v55, %v1806_v54 }
 0xe65   :  { %v4050_v56 = vpop.f32.mrf.mxu1 }
 0xe66   :  { %v1863_v62 = vmax.f32 %v1857_v57, 0.0 }
 0xe67   :  { %v1859_v58 = vpop.f32.mrf.mxu1 }
 0xe68   :  { %v1860_v59 = vadd.f32 %v1859_v58, %v1806_v54 }
 0xe69   :  { %v4051_v60 = vpop.f32.mrf.mxu1 }
 0xe6a   :  { %v1864_v1 = vmax.f32 %v1860_v59, 0.0 }
 0xe6c   :  { %v1865_v2 = vpack.c.bf16 %v1864_v1, %v1863_v62 }
 0xe6e   :  { %4061 = vmatmul.mubr.msk.bf16.vlgmr.msra.gmra.mxu0 %vm1894_vm5, %v1865_v2 }
 0xe6f   :  { %4084 = vmatprep.mubr.msk.f32.mxu0 %vm4554_vm0, %v4553_v0 }
 0xf2e   :  { %v1932_v61 = vpop.f32.mrf.mxu0 }
 0xf2f   :  { %v1933_v5 = vadd.f32 %v1932_v61, %v1869_v4 }
 0xf30   :  { %v4062_v6 = vpop.f32.mrf.mxu0 }
 0xf31   :  { %v1939_v7 = vadd.f32 %v1933_v5, %v1800_v47 }
 0xf32   :  { %v1935_v8 = vpop.f32.mrf.mxu0 }
 0xf33   :  { %v1936_v9 = vadd.f32 %v1935_v8, %v1869_v4  ;;  %v1941_v10 = vsel %vm241_vm1, %v1939_v7, 0.0 }
 0xf34   :  { %1942 = vadd.xlane.f32.xlu0 %v1941_v10  ;;  %v4063_v11 = vpop.f32.mrf.mxu0 }
 0xf35   :  { %v1940_v12 = vadd.f32 %v1936_v9, %v1801_v48 }
 0xf37   :  { %v1944_v13 = vsel %vm241_vm1, %v1940_v12, 0.0 }
 0xf38   :  { %1945 = vadd.xlane.f32.xlu1 %v1944_v13 }
 0xfbd   :  { %v1943_v14 = vpop.xlane.xlu0 %1942 }
 0xfbe   :  { %v1947_v15 = vmul.f32 0.03125, %v1943_v14 }
 0xfc0   :  { %v1949_v16 = vsub.f32 %v1939_v7, %v1947_v15 }
 0xfc1   :  { %v1946_v19 = vpop.xlane.xlu1 %1945 }
 0xfc2   :  { %v1948_v20 = vmul.f32 0.03125, %v1946_v19  ;;  %v1951_v24 = vmul.f32 %v1949_v16, %v1949_v16 }
 0xfc4   :  { %v1950_v25 = vsub.f32 %v1940_v12, %v1948_v20  ;;  %v1953_v27 = vsel %vm241_vm1, %v1951_v24, 0.0 }
 0xfc5   :  { %1954 = vadd.xlane.f32.xlu0 %v1953_v27 }
 0xfc6   :  { %v1952_v17 = vmul.f32 %v1950_v25, %v1950_v25 }
 0xfc8   :  { %v1956_v28 = vsel %vm241_vm1, %v1952_v17, 0.0 }
 0xfc9   :  { %1957 = vadd.xlane.f32.xlu1 %v1956_v28 }
0x104e   :  { %v1955_v31 = vpop.xlane.xlu0 %1954 }
0x104f   :  { %v1959_v32 = vmul.f32 0.03125, %v1955_v31 }
0x1051   :  { %v1961_v33 = vadd.f32 1e-05, %v1959_v32 }
0x1052   :  { %v1958_v26 = vpop.xlane.xlu1 %1957 }
0x1053   :  { %4305 = vrsqrt.f32 %v1961_v33  ;;  %v1960_v34 = vmul.f32 0.03125, %v1958_v26 }
0x1055   :  { %v1962_v35 = vadd.f32 1e-05, %v1960_v34 }
0x1057   :  { %4307 = vrsqrt.f32 %v1962_v35 }
0x1060   :  { %v4306_v37 = vpop.eup %4305 }
0x1061   :  { %v1965_v39 = vmul.f32 %v4306_v37, %v1949_v16 }
0x1063   :  { %v1971_v44 = vmul.f32 %v1970_v40, %v1965_v39 }
0x1064   :  { %v4308_v43 = vpop.eup %4307 }
0x1065   :  { %v1966_v29 = vmul.f32 %v4308_v43, %v1950_v25  ;;  %v4993_v47 = vadd.f32 %v1976_v45, %v1971_v44 }
0x1067   :  { %v1972_v46 = vmul.f32 %v1970_v40, %v1966_v29 }
0x1069   :  { %v4995_v48 = vadd.f32 %v1976_v45, %v1972_v46 }
0x106b   :  { %v1979_v49 = vpack.c.bf16 %v4995_v48, %v4993_v47 }
0x106d   :  { %4069 = vmatmul.mubr.msk.bf16.vlgmr.msra.gmra.mxu1 %vm241_vm1, %v1979_v49 }
0x106e   :  { %4074 = vmatprep.mubr.msk.f32.mxu1 %vm4554_vm0, %v4553_v0 }
0x112d   :  { %v2033_v22 = vpop.f32.mrf.mxu1 }
0x112e   :  { %v5007_v52 = vadd.f32 %v2033_v22, %v1983_v51 }
0x112f   :  { %v4070_v54 = vpop.f32.mrf.mxu1 }
0x1130   :  { %2041 = vrot.lane.b32.xlu0 %v5007_v52, %s4555_s19 }
0x1131   :  { %v2036_v55 = vpop.f32.mrf.mxu1 }
0x1132   :  { %v5011_v56 = vadd.f32 %v2036_v55, %v1983_v51 }
0x1133   :  { %v4071_v57 = vpop.f32.mrf.mxu1 }
0x1134   :  { %2118 = vrot.lane.b32.xlu1 %v5011_v56, %s4555_s19  ;;  %s5271_s19 = smov 24  }
0x11a2   :  { %v2042_v58 = vpop.permute.xlu0 %2041 }
0x11a3   :  { %4073 = vmatpush3.xpose.msk.msra.mxu1 %vm352_vm2, %v2042_v58 }
0x11a4   :  { %4077 = vmatprep.subr.mxu1 %v4553_v0 }
0x11a6   :  { %4075 = vmatmul.mubr.msk.f32.vlgmr.msra.gmra.mxu1 %vm352_vm2, %v5007_v52  ;;  %v2119_v21 = vpop.permute.xlu1 %2118 }
0x11a7   :  { %4078 = vmatpush3.xpose.msk.msra.mxu1 %vm352_vm2, %v2119_v21  ;;  %4079 = vmatprep.mubr.msk.f32.mxu1 %vm4554_vm0, %v4553_v0 }
0x11a8   :  { %4087 = vmatprep.subr.mxu1 %v4553_v0 }
0x11aa   :  { %4080 = vmatmul.mubr.msk.f32.vlgmr.msra.gmra.mxu1 %vm352_vm2, %v5011_v56 }
0x11ab   :  { %4089 = vmatprep.mubr.msk.f32.mxu1 %vm4554_vm0, %v4553_v0 }
0x1266   :  { %v2113_v23 = vpop.f32.mrf.mxu1 }
0x1267   :  { %v2194_v59 = vsel %vm352_vm2, %v2113_v23, -inf }
0x1268   :  { %2195 = vmax.xlane.f32.xlu1 %v2194_v59  ;;  %v4076_v60 = vpop.f32.mrf.mxu1 }
0x126a   :  { %v2190_v62 = vpop.f32.mrf.mxu1 }
0x126b   :  { %v2197_v1 = vsel %vm352_vm2, %v2190_v62, -inf }
0x126c   :  { %2198 = vmax.xlane.f32.xlu0 %v2197_v1  ;;  %v4081_v2 = vpop.f32.mrf.mxu1 }
0x1279   :  { %2292 = vrot.lane.b32.xlu1 %v5011_v56, %s4548_s7 }
0x127d   :  { %2370 = vrot.lane.b32.xlu1 %v5007_v52, %s4556_s0 }
0x1282   :  { %2216 = vrot.lane.b32.xlu0 %v5007_v52, %s4548_s7 }
0x12f1   :  { %v2196_v4 = vpop.xlane.xlu1 %2195 }
0x12f2   :  { %v2200_v61 = vsub.f32 %v2113_v23, %v2196_v4 }
0x12f4   :  { %v2202_v5 = vmul.f32 1.442695, %v2200_v61 }
0x12f5   :  { %v2293_v6 = vpop.permute.xlu1 %2292  ;;  %v2199_v7 = vpop.xlane.xlu0 %2198 }
0x12f6   :  { %4309 = vpow2.f32 %v2202_v5  ;;  %v2201_v8 = vsub.f32 %v2190_v62, %v2199_v7  ;;  %4088 = vmatpush3.msra.mxu1 %v2293_v6 }
0x12f7   :  { %4097 = vmatprep.subr.mxu1 %v4553_v0 }
0x12f8   :  { %v2204_v9 = vmul.f32 1.442695, %v2201_v8 }
0x12f9   :  { %v2217_v10 = vpop.permute.xlu0 %2216  ;;  %v2371_v15 = vpop.permute.xlu1 %2370 }
0x12fa   :  { %4311 = vpow2.f32 %v2204_v9  ;;  %4083 = vmatpush3.msra.mxu0 %v2217_v10 }
0x12fb   :  { %4092 = vmatprep.subr.mxu0 %v4553_v0 }
0x1303   :  { %v4310_v11 = vpop.eup %4309 }
0x1304   :  { %v2206_v12 = vsel %vm352_vm2, %v4310_v11, 0.0 }
0x1305   :  { %2207 = vadd.xlane.f32.xlu0 %v2206_v12 }
0x1307   :  { %v4312_v13 = vpop.eup %4311 }
0x1308   :  { %v2209_v14 = vsel %vm352_vm2, %v4312_v13, 0.0 }
0x1309   :  { %2210 = vadd.xlane.f32.xlu1 %v2209_v14 }
0x131a   :  { %2368 = vrot.lane.b32.xlu1 %v5007_v52, %s4557_s21 }
0x131b   :  { %2448 = vrot.lane.b32.xlu0 %v5011_v56, %s4556_s0 }
0x131f   :  { %2446 = vrot.lane.b32.xlu0 %v5011_v56, %s4557_s21 }
0x138e   :  { %v2208_v16 = vpop.xlane.xlu0 %2207 }
0x138f   :  { %4313 = vrcp.f32 %v2208_v16 }
0x1392   :  { %v2211_v19 = vpop.xlane.xlu1 %2210  ;;  %v2449_v27 = vpop.permute.xlu0 %2448 }
0x1393   :  { %4315 = vrcp.f32 %v2211_v19 }
0x1396   :  { %v2369_v28 = vpop.permute.xlu1 %2368  ;;  %v2447_v30 = vpop.permute.xlu0 %2446 }
0x139c   :  { %v4314_v20 = vpop.eup %4313 }
0x139d   :  { %v2214_v24 = vmul.f32 %v4314_v20, %v4310_v11 }
0x139f   :  { %4085 = vmatmul.mubr.msk.f32.vlgmr.msra.gmra.mxu0 %vm352_vm2, %v2214_v24 }
0x13a0   :  { %v4316_v25 = vpop.eup %4315  ;;  %4093 = vmatpush3.xpose.msk.msra.mxu0 %vm352_vm2, %v2371_v15  ;;  %4094 = vmatprep.mubr.msk.f32.mxu0 %vm4554_vm0, %v4553_v0 }
0x13a1   :  { %v2215_v17 = vmul.f32 %v4316_v25, %v4312_v13  ;;  %4102 = vmatprep.subr.mxu0 %v4553_v0 }
0x13a3   :  { %4090 = vmatmul.mubr.msk.f32.vlgmr.msra.gmra.mxu1 %vm352_vm2, %v2215_v17  ;;  %4095 = vmatmul.mubr.msk.f32.vlgmr.msra.gmra.mxu0 %vm352_vm2, %v2369_v28 }
0x13a4   :  { %4098 = vmatpush3.xpose.msk.msra.mxu1 %vm352_vm2, %v2449_v27  ;;  %4099 = vmatprep.mubr.msk.f32.mxu1 %vm4554_vm0, %v4553_v0 }
0x13a5   :  { %4107 = vmatprep.subr.mxu1 %v4553_v0  ;;  %4104 = vmatprep.mubr.msk.f32.mxu0 %vm4554_vm0, %v4553_v0 }
0x13a7   :  { %4100 = vmatmul.mubr.msk.f32.vlgmr.msra.gmra.mxu1 %vm352_vm2, %v2447_v30 }
0x13a8   :  { %4109 = vmatprep.mubr.msk.f32.mxu1 %vm4554_vm0, %v4553_v0 }
0x145f   :  { %v5061_v18 = vpop.f32.mrf.mxu0 }
0x1461   :  { %v4086_v31 = vpop.f32.mrf.mxu0 }
0x1463   :  { %v5063_v32 = vpop.f32.mrf.mxu1  ;;  %v2442_v33 = vpop.f32.mrf.mxu0 }
0x1464   :  { %v2524_v26 = vsel %vm352_vm2, %v2442_v33, -inf }
0x1465   :  { %v4091_v34 = vpop.f32.mrf.mxu1  ;;  %2525 = vmax.xlane.f32.xlu1 %v2524_v26  ;;  %v4096_v35 = vpop.f32.mrf.mxu0 }
0x1467   :  { %v2520_v37 = vpop.f32.mrf.mxu1 }
0x1468   :  { %v2527_v39 = vsel %vm352_vm2, %v2520_v37, -inf }
0x1469   :  { %2528 = vmax.xlane.f32.xlu0 %v2527_v39  ;;  %v4101_v40 = vpop.f32.mrf.mxu1 }
0x1476   :  { %2622 = vrot.lane.b32.xlu1 %v5011_v56, %s4558_s22 }
0x147a   :  { %2700 = vrot.lane.b32.xlu1 %v5007_v52, %s4559_s3 }
0x147f   :  { %2546 = vrot.lane.b32.xlu0 %v5007_v52, %s4558_s22 }
0x14ee   :  { %v2526_v43 = vpop.xlane.xlu1 %2525 }
0x14ef   :  { %v2530_v29 = vsub.f32 %v2442_v33, %v2526_v43 }
0x14f1   :  { %v2532_v44 = vmul.f32 1.442695, %v2530_v29 }
0x14f2   :  { %v2529_v45 = vpop.xlane.xlu0 %2528  ;;  %v2623_v46 = vpop.permute.xlu1 %2622 }
0x14f3   :  { %4317 = vpow2.f32 %v2532_v44  ;;  %v2531_v49 = vsub.f32 %v2520_v37, %v2529_v45  ;;  %4108 = vmatpush3.msra.mxu1 %v2623_v46 }
0x14f4   :  { %4117 = vmatprep.subr.mxu1 %v4553_v0 }
0x14f5   :  { %v2534_v51 = vmul.f32 1.442695, %v2531_v49 }
0x14f6   :  { %v2547_v22 = vpop.permute.xlu0 %2546  ;;  %v2701_v21 = vpop.permute.xlu1 %2700 }
0x14f7   :  { %4319 = vpow2.f32 %v2534_v51  ;;  %4103 = vmatpush3.msra.mxu0 %v2547_v22 }
0x14f8   :  { %4112 = vmatprep.subr.mxu0 %v4553_v0 }
0x1500   :  { %v4318_v54 = vpop.eup %4317 }
0x1501   :  { %v2536_v55 = vsel %vm352_vm2, %v4318_v54, 0.0 }
0x1502   :  { %2537 = vadd.xlane.f32.xlu0 %v2536_v55 }
0x1504   :  { %v4320_v57 = vpop.eup %4319 }
0x1505   :  { %v2539_v58 = vsel %vm352_vm2, %v4320_v57, 0.0 }
0x1506   :  { %2540 = vadd.xlane.f32.xlu1 %v2539_v58 }
0x1517   :  { %2698 = vrot.lane.b32.xlu1 %v5007_v52, %s4560_s30 }
0x1518   :  { %2778 = vrot.lane.b32.xlu0 %v5011_v56, %s4559_s3 }
0x151c   :  { %2776 = vrot.lane.b32.xlu0 %v5011_v56, %s4560_s30 }
0x158b   :  { %v2538_v23 = vpop.xlane.xlu0 %2537 }
0x158c   :  { %4321 = vrcp.f32 %v2538_v23 }
0x158f   :  { %v2541_v59 = vpop.xlane.xlu1 %2540  ;;  %v2779_v2 = vpop.permute.xlu0 %2778 }
0x1590   :  { %4323 = vrcp.f32 %v2541_v59 }
0x1593   :  { %v2699_v61 = vpop.permute.xlu1 %2698  ;;  %v2777_v5 = vpop.permute.xlu0 %2776 }
0x1599   :  { %v4322_v60 = vpop.eup %4321 }
0x159a   :  { %v2544_v62 = vmul.f32 %v4322_v60, %v4318_v54 }
0x159c   :  { %4105 = vmatmul.mubr.msk.f32.vlgmr.msra.gmra.mxu0 %vm352_vm2, %v2544_v62 }
0x159d   :  { %v4324_v1 = vpop.eup %4323  ;;  %4113 = vmatpush3.xpose.msk.msra.mxu0 %vm352_vm2, %v2701_v21  ;;  %4114 = vmatprep.mubr.msk.f32.mxu0 %vm4554_vm0, %v4553_v0 }
0x159e   :  { %v2545_v4 = vmul.f32 %v4324_v1, %v4320_v57  ;;  %4122 = vmatprep.subr.mxu0 %v4553_v0 }
0x15a0   :  { %4110 = vmatmul.mubr.msk.f32.vlgmr.msra.gmra.mxu1 %vm352_vm2, %v2545_v4  ;;  %4115 = vmatmul.mubr.msk.f32.vlgmr.msra.gmra.mxu0 %vm352_vm2, %v2699_v61 }
0x15a1   :  { %4118 = vmatpush3.xpose.msk.msra.mxu1 %vm352_vm2, %v2779_v2  ;;  %4119 = vmatprep.mubr.msk.f32.mxu1 %vm4554_vm0, %v4553_v0 }
0x15a2   :  { %4127 = vmatprep.subr.mxu1 %v4553_v0  ;;  %4124 = vmatprep.mubr.msk.f32.mxu0 %vm4554_vm0, %v4553_v0 }
0x15a4   :  { %4120 = vmatmul.mubr.msk.f32.vlgmr.msra.gmra.mxu1 %vm352_vm2, %v2777_v5 }
0x15a5   :  { %4129 = vmatprep.mubr.msk.f32.mxu1 %vm4554_vm0, %v4553_v0 }
0x165c   :  { %v5099_v6 = vpop.f32.mrf.mxu0 }
0x165e   :  { %v4106_v7 = vpop.f32.mrf.mxu0 }
0x1660   :  { %v5101_v8 = vpop.f32.mrf.mxu1  ;;  %v2772_v9 = vpop.f32.mrf.mxu0 }
0x1661   :  { %v4230_v10 = vpack.i.bf16 %v5101_v8, %v5099_v6  ;;  %v2854_v11 = vsel %vm352_vm2, %v2772_v9, -inf }
0x1662   :  { %v4111_v12 = vpop.f32.mrf.mxu1  ;;  %2855 = vmax.xlane.f32.xlu1 %v2854_v11  ;;  %v4116_v13 = vpop.f32.mrf.mxu0 }
0x1664   :  { %v2850_v14 = vpop.f32.mrf.mxu1 }
0x1665   :  { %v2857_v15 = vsel %vm352_vm2, %v2850_v14, -inf }
0x1666   :  { %2858 = vmax.xlane.f32.xlu0 %v2857_v15  ;;  %v4121_v16 = vpop.f32.mrf.mxu1 }
0x1673   :  { %2952 = vrot.lane.b32.xlu1 %v5011_v56, %s4561_s2 }
0x1677   :  { %3030 = vrot.lane.b32.xlu1 %v5007_v52, %s4562_s23 }
0x167c   :  { %2876 = vrot.lane.b32.xlu0 %v5007_v52, %s4561_s2 }
0x16eb   :  { %v2856_v19 = vpop.xlane.xlu1 %2855 }
0x16ec   :  { %v2860_v20 = vsub.f32 %v2772_v9, %v2856_v19 }
0x16ee   :  { %v2862_v24 = vmul.f32 1.442695, %v2860_v20  ;;  %v4260_v20 = vld [vmem:[%s5251_s6 + $0x10] sm:$0xff]  }
0x16ef   :  { %v2859_v25 = vpop.xlane.xlu0 %2858  ;;  %v2953_v27 = vpop.permute.xlu1 %2952 }
0x16f0   :  { %4325 = vpow2.f32 %v2862_v24  ;;  %v2861_v17 = vsub.f32 %v2850_v14, %v2859_v25  ;;  %4128 = vmatpush3.msra.mxu1 %v2953_v27 }
0x16f1   :  { %4137 = vmatprep.subr.mxu1 %v4553_v0 }
0x16f2   :  { %v2864_v28 = vmul.f32 1.442695, %v2861_v17 }
0x16f3   :  { %v2877_v30 = vpop.permute.xlu0 %2876  ;;  %v3031_v35 = vpop.permute.xlu1 %3030 }
0x16f4   :  { %4327 = vpow2.f32 %v2864_v28  ;;  %4123 = vmatpush3.msra.mxu0 %v2877_v30 }
0x16f5   :  { %4132 = vmatprep.subr.mxu0 %v4553_v0 }
0x16fd   :  { %v4326_v31 = vpop.eup %4325 }
0x16fe   :  { %v2866_v33 = vsel %vm352_vm2, %v4326_v31, 0.0 }
0x16ff   :  { %2867 = vadd.xlane.f32.xlu0 %v2866_v33 }
0x1701   :  { %v4328_v26 = vpop.eup %4327 }
0x1702   :  { %v2869_v34 = vsel %vm352_vm2, %v4328_v26, 0.0 }
0x1703   :  { %2870 = vadd.xlane.f32.xlu1 %v2869_v34 }
0x1714   :  { %3028 = vrot.lane.b32.xlu1 %v5007_v52, %s4563_s24 }
0x1715   :  { %3108 = vrot.lane.b32.xlu0 %v5011_v56, %s4562_s23 }
0x1719   :  { %3106 = vrot.lane.b32.xlu0 %v5011_v56, %s4563_s24 }
0x1788   :  { %v2868_v37 = vpop.xlane.xlu0 %2867 }
0x1789   :  { %4329 = vrcp.f32 %v2868_v37 }
0x178c   :  { %v2871_v39 = vpop.xlane.xlu1 %2870  ;;  %v3109_v44 = vpop.permute.xlu0 %3108 }
0x178d   :  { %4331 = vrcp.f32 %v2871_v39 }
0x1790   :  { %v3029_v46 = vpop.permute.xlu1 %3028  ;;  %v3107_v49 = vpop.permute.xlu0 %3106 }
0x1796   :  { %v4330_v40 = vpop.eup %4329 }
0x1797   :  { %v2874_v43 = vmul.f32 %v4330_v40, %v4326_v31 }
0x1799   :  { %4125 = vmatmul.mubr.msk.f32.vlgmr.msra.gmra.mxu0 %vm352_vm2, %v2874_v43 }
0x179a   :  { %v4332_v29 = vpop.eup %4331  ;;  %4133 = vmatpush3.xpose.msk.msra.mxu0 %vm352_vm2, %v3031_v35  ;;  %4134 = vmatprep.mubr.msk.f32.mxu0 %vm4554_vm0, %v4553_v0 }
0x179b   :  { %v2875_v45 = vmul.f32 %v4332_v29, %v4328_v26  ;;  %4142 = vmatprep.subr.mxu0 %v4553_v0 }
0x179d   :  { %4130 = vmatmul.mubr.msk.f32.vlgmr.msra.gmra.mxu1 %vm352_vm2, %v2875_v45  ;;  %4135 = vmatmul.mubr.msk.f32.vlgmr.msra.gmra.mxu0 %vm352_vm2, %v3029_v46 }
0x179e   :  { %4138 = vmatpush3.xpose.msk.msra.mxu1 %vm352_vm2, %v3109_v44  ;;  %4139 = vmatprep.mubr.msk.f32.mxu1 %vm4554_vm0, %v4553_v0 }
0x179f   :  { %4147 = vmatprep.subr.mxu1 %v4553_v0  ;;  %4144 = vmatprep.mubr.msk.f32.mxu0 %vm4554_vm0, %v4553_v0 }
0x17a1   :  { %4140 = vmatmul.mubr.msk.f32.vlgmr.msra.gmra.mxu1 %vm352_vm2, %v3107_v49 }
0x17a2   :  { %4149 = vmatprep.mubr.msk.f32.mxu1 %vm4554_vm0, %v4553_v0 }
0x1859   :  { %v2948_v51 = vpop.f32.mrf.mxu0 }
0x185b   :  { %v4126_v22 = vpop.f32.mrf.mxu0 }
0x185d   :  { %v3024_v54 = vpop.f32.mrf.mxu1  ;;  %v3102_v55 = vpop.f32.mrf.mxu0 }
0x185e   :  { %v4235_v57 = vpack.i.bf16 %v3024_v54, %v2948_v51  ;;  %v3184_v58 = vsel %vm352_vm2, %v3102_v55, -inf }
0x185f   :  { %v4131_v21 = vpop.f32.mrf.mxu1  ;;  %3185 = vmax.xlane.f32.xlu1 %v3184_v58  ;;  %v4136_v23 = vpop.f32.mrf.mxu0 }
0x1861   :  { %v3180_v59 = vpop.f32.mrf.mxu1 }
0x1862   :  { %v3187_v60 = vsel %vm352_vm2, %v3180_v59, -inf }
0x1863   :  { %3188 = vmax.xlane.f32.xlu0 %v3187_v60  ;;  %v4141_v62 = vpop.f32.mrf.mxu1 }
0x18e8   :  { %v3186_v1 = vpop.xlane.xlu1 %3185 }
0x18e9   :  { %v3190_v2 = vsub.f32 %v3102_v55, %v3186_v1 }
0x18eb   :  { %v3192_v4 = vmul.f32 1.442695, %v3190_v2 }
0x18ec   :  { %v3189_v61 = vpop.xlane.xlu0 %3188 }
0x18ed   :  { %4333 = vpow2.f32 %v3192_v4  ;;  %v3191_v5 = vsub.f32 %v3180_v59, %v3189_v61 }
0x18ef   :  { %v3194_v7 = vmul.f32 1.442695, %v3191_v5 }
0x18f1   :  { %4335 = vpow2.f32 %v3194_v7 }
0x18fa   :  { %v4334_v9 = vpop.eup %4333 }
0x18fb   :  { %v3196_v11 = vsel %vm352_vm2, %v4334_v9, 0.0 }
0x18fc   :  { %3197 = vadd.xlane.f32.xlu0 %v3196_v11  ;;  %v4262_v11 = vld [vmem:[%s5257_s12 + $0x10] sm:$0xff]  }
0x18fe   :  { %v4336_v12 = vpop.eup %4335 }
0x18ff   :  { %v3199_v13 = vsel %vm352_vm2, %v4336_v12, 0.0 }
0x1900   :  { %3200 = vadd.xlane.f32.xlu1 %v3199_v13 }
0x1911   :  { %3282 = vrot.lane.b32.xlu1 %v5011_v56, %s4564_s25 }
0x1912   :  { %3206 = vrot.lane.b32.xlu0 %v5007_v52, %s4564_s25 }
0x1915   :  { %4231 = vrot.lane.b32.xlu1 %v4230_v10, %s4544_s1  ;;  %v4259_v10 = vld [vmem:[%s5251_s6 + $0x18] sm:$0xff]  }
0x1916   :  { %4236 = vrot.lane.b32.xlu0 %v4235_v57, %s4565_s26 }
0x1985   :  { %v3198_v14 = vpop.xlane.xlu0 %3197 }
0x1986   :  { %4337 = vrcp.f32 %v3198_v14 }
0x1989   :  { %v3207_v15 = vpop.permute.xlu0 %3206  ;;  %v3201_v16 = vpop.xlane.xlu1 %3200 }
0x198a   :  { %4339 = vrcp.f32 %v3201_v16  ;;  %4143 = vmatpush3.msra.mxu0 %v3207_v15 }
0x198b   :  { %4152 = vmatprep.subr.bf16.mxu0 %v4553_v0 }
0x198d   :  { %v3283_v19 = vpop.permute.xlu1 %3282  ;;  %v4237_v26 = vpop.permute.xlu0 %4236 }
0x198e   :  { %4148 = vmatpush3.msra.mxu1 %v3283_v19  ;;  %v4239_v37 = vunpack.i.h.bf16 %v4237_v26  ;;  %v4238_v39 = vunpack.i.l.bf16 %v4237_v26 }
0x198f   :  { %4160 = vmatprep.subr.bf16.mxu1 %v4553_v0 }
0x1991   :  { %v4232_v30 = vpop.permute.xlu1 %4231 }
0x1992   :  { %v4234_v31 = vunpack.i.h.bf16 %v4232_v30  ;;  %v4233_v33 = vunpack.i.l.bf16 %v4232_v30 }
0x1993   :  { %v4338_v52 = vpop.eup %4337 }
0x1994   :  { %v3204_v56 = vmul.f32 %v4338_v52, %v4334_v9  ;;  %v3383_v34 = vsel %vm352_vm2, %v5063_v32, %v4234_v31  ;;  %v3382_v35 = vsel %vm352_vm2, %v5061_v18, %v4233_v33  ;;  %v3392_v18 = vrot.slane %v4905_v63, %v5003_v50  ;;  %v4264_v31 = vld [vmem:[%s5259_s14 + $0x30] sm:$0xff]  }
0x1995   :  { %v3384_v44 = vsel %vm1694_vm3, %v3382_v35, %v4238_v39  ;;  %v3385_v45 = vsel %vm1694_vm3, %v3383_v34, %v4239_v37  ;;  %v3493_v33 = vrot.slane %v4953_v53, %v5003_v50 }
0x1996   :  { %4145 = vmatmul.mubr.msk.f32.vlgmr.msra.gmra.mxu0 %vm352_vm2, %v3204_v56 }
0x1997   :  { %v4340_v6 = vpop.eup %4339  ;;  %4156 = vmatprep.mubr.msk.bf16.mxu0 %vm4554_vm0, %v4553_v0  ;;  %4153 = vmatpush3.bf16.msra.mxu0 %v4259_v10 }
0x1998   :  { %v3205_v8 = vmul.f32 %v4340_v6, %v4336_v12  ;;  %4154 = vmatprep.subr.bf16.mxu0 %v4553_v0  ;;  %v4263_v12 = vld [vmem:[%s5259_s14 + $0x38] sm:$0xff]  }
0x199a   :  { %4150 = vmatmul.mubr.msk.f32.vlgmr.msra.gmra.mxu1 %vm352_vm2, %v3205_v8  ;;  %v3480_v8 = vrot.slane %v4927_v38, %v5003_v50  ;;  %v4265_v38 = vld [vmem:[%s5259_s14 + $0x28] sm:$0xff]  }
0x199b   :  { %4164 = vmatprep.mubr.msk.bf16.mxu1 %vm4554_vm0, %v4553_v0  ;;  %4155 = vmatpush3.bf16.msra.mxu0 %v4260_v20 }
0x199c   :  { %4168 = vmatprep.subr.bf16.mxu0 %v4553_v0 }
0x1a56   :  { %v3278_v24 = vpop.f32.mrf.mxu0 }
0x1a58   :  { %v4146_v25 = vpop.f32.mrf.mxu0 }
0x1a59   :  { %v3486_v25 = vrot.slane %v4931_v42, %v5003_v50  ;;  %v4266_v42 = vld [vmem:[%s5259_s14 + $0x20] sm:$0xff]  }
0x1a5a   :  { %v3354_v27 = vpop.f32.mrf.mxu1 }
0x1a5b   :  { %v4240_v17 = vpack.i.bf16 %v3354_v27, %v3278_v24 }
0x1a5c   :  { %v4151_v28 = vpop.f32.mrf.mxu1 }
0x1a5d   :  { %4241 = vrot.lane.b32.xlu1 %v4240_v17, %s5271_s19 }
0x1acf   :  { %v4242_v40 = vpop.permute.xlu1 %4241 }
0x1ad0   :  { %v4244_v43 = vunpack.i.h.bf16 %v4242_v40  ;;  %v4243_v29 = vunpack.i.l.bf16 %v4242_v40 }
0x1ad2   :  { %v3387_v46 = vsel %vm1697_vm4, %v3385_v45, %v4244_v43  ;;  %v3386_v49 = vsel %vm1697_vm4, %v3384_v44, %v4243_v29  ;;  %v3556_v45 = vrot.slane %v4963_v3, %v5003_v50 }
0x1ad3   :  { %v3388_v51 = vpack.c.bf16 %v3387_v46, %v3386_v49 }
0x1ad5   :  { %4157 = vmatmul.mubr.msk.bf16.vlgmr.msra.gmra.mxu0 %vm241_vm1, %v3388_v51 }
0x1ad6   :  { %4176 = vmatprep.mubr.msk.bf16.mxu0 %vm4554_vm0, %v4553_v0  ;;  %4169 = vmatpush3.bf16.msra.mxu0 %v4263_v12  ;;  %v3656_v12 = vrot.slane %v4982_v36, %v5003_v50 }
0x1ad7   :  { %4170 = vmatprep.subr.bf16.mxu0 %v4553_v0 }
0x1ada   :  { %4171 = vmatpush3.bf16.msra.mxu0 %v4264_v31 }
0x1adb   :  { %4172 = vmatprep.subr.bf16.mxu0 %v4553_v0 }
0x1ade   :  { %4173 = vmatpush3.bf16.msra.mxu0 %v4265_v38 }
0x1adf   :  { %4174 = vmatprep.subr.bf16.mxu0 %v4553_v0 }
0x1ae2   :  { %4175 = vmatpush3.bf16.msra.mxu0 %v4266_v42 }
0x1b95   :  { %v3442_v32 = vpop.f32.mrf.mxu0 }
0x1b96   :  { %v3443_v22 = vadd.f32 %v3442_v32, %v3392_v18 }
0x1b97   :  { %v4158_v54 = vpop.f32.mrf.mxu0 }
0x1b98   :  { %v3449_v55 = vadd.f32 %v3443_v22, %v4993_v47 }
0x1b99   :  { %v3445_v57 = vpop.f32.mrf.mxu0 }
0x1b9a   :  { %v3446_v58 = vadd.f32 %v3445_v57, %v3392_v18  ;;  %v3451_v21 = vsel %vm241_vm1, %v3449_v55, 0.0 }
0x1b9b   :  { %3452 = vadd.xlane.f32.xlu0 %v3451_v21  ;;  %v4159_v23 = vpop.f32.mrf.mxu0 }
0x1b9c   :  { %v3450_v59 = vadd.f32 %v3446_v58, %v4995_v48  ;;  %v4261_v48 = vld [vmem:[%s5257_s12 + $0x18] sm:$0xff]  }
0x1b9d   :  { %4161 = vmatpush3.bf16.msra.mxu1 %v4261_v48 }
0x1b9e   :  { %v3454_v60 = vsel %vm241_vm1, %v3450_v59, 0.0  ;;  %4162 = vmatprep.subr.bf16.mxu1 %v4553_v0 }
0x1b9f   :  { %3455 = vadd.xlane.f32.xlu1 %v3454_v60 }
0x1ba1   :  { %4163 = vmatpush3.bf16.msra.mxu1 %v4262_v11 }
0x1ba2   :  { %4180 = vmatprep.subr.bf16.mxu1 %v4553_v0 }
0x1c24   :  { %v3453_v62 = vpop.xlane.xlu0 %3452 }
0x1c25   :  { %v3457_v1 = vmul.f32 0.03125, %v3453_v62 }
0x1c27   :  { %v3459_v2 = vsub.f32 %v3449_v55, %v3457_v1 }
0x1c28   :  { %v3456_v63 = vpop.xlane.xlu1 %3455 }
0x1c29   :  { %v3458_v4 = vmul.f32 0.03125, %v3456_v63  ;;  %v3461_v61 = vmul.f32 %v3459_v2, %v3459_v2 }
0x1c2b   :  { %v3460_v5 = vsub.f32 %v3450_v59, %v3458_v4  ;;  %v3463_v47 = vsel %vm241_vm1, %v3461_v61, 0.0  ;;  %v4267_v4 = vld [vmem:[%s5261_s16 + $0x8] sm:$0xff]   ;;  %v4268_v61 = vld [vmem:[%s5261_s16] sm:$0xff]  }
0x1c2c   :  { %3464 = vadd.xlane.f32.xlu0 %v3463_v47 }
0x1c2d   :  { %v3462_v7 = vmul.f32 %v3460_v5, %v3460_v5 }
0x1c2f   :  { %v3466_v9 = vsel %vm241_vm1, %v3462_v7, 0.0 }
0x1c30   :  { %3467 = vadd.xlane.f32.xlu0 %v3466_v9 }
0x1cb5   :  { %v3465_v13 = vpop.xlane.xlu0 %3464 }
0x1cb6   :  { %v3469_v14 = vmul.f32 0.03125, %v3465_v13 }
0x1cb8   :  { %v3471_v15 = vadd.f32 1e-05, %v3469_v14  ;;  %v3662_v14 = vrot.slane %v4989_v41, %v5003_v50  ;;  %v3838_v41 = vld [vmem:[%s5262_s17] ss:$0 sm:$0xff] }
0x1cb9   :  { %v3468_v16 = vpop.xlane.xlu0 %3467 }
0x1cba   :  { %4341 = vrsqrt.f32 %v3471_v15  ;;  %v3470_v19 = vmul.f32 0.03125, %v3468_v16 }
0x1cbc   :  { %v3472_v52 = vadd.f32 1e-05, %v3470_v19 }
0x1cbe   :  { %4343 = vrsqrt.f32 %v3472_v52 }
0x1cc7   :  { %v4342_v56 = vpop.eup %4341 }
0x1cc8   :  { %v3475_v6 = vmul.f32 %v4342_v56, %v3459_v2 }
0x1cca   :  { %v3481_v24 = vmul.f32 %v3480_v8, %v3475_v6 }
0x1ccb   :  { %v4344_v10 = vpop.eup %4343 }
0x1ccc   :  { %v3476_v20 = vmul.f32 %v4344_v10, %v3460_v5  ;;  %v3487_v17 = vadd.f32 %v3486_v25, %v3481_v24 }
0x1cce   :  { %v3482_v27 = vmul.f32 %v3480_v8, %v3476_v20 }
0x1cd0   :  { %v3488_v28 = vadd.f32 %v3486_v25, %v3482_v27 }
0x1cd2   :  { %v3489_v30 = vpack.c.bf16 %v3488_v28, %v3487_v17 }
0x1cd4   :  { %4165 = vmatmul.mubr.msk.bf16.vlgmr.msra.gmra.mxu1 %vm241_vm1, %v3489_v30 }
0x1cd5   :  { %4184 = vmatprep.mubr.msk.bf16.mxu1 %vm4554_vm0, %v4553_v0  ;;  %4181 = vmatpush3.bf16.msra.mxu1 %v4267_v4 }
0x1cd6   :  { %4182 = vmatprep.subr.bf16.mxu1 %v4553_v0 }
0x1cd9   :  { %4183 = vmatpush3.bf16.msra.mxu1 %v4268_v61 }
0x1d94   :  { %v3543_v26 = vpop.f32.mrf.mxu1 }
0x1d95   :  { %v3544_v35 = vadd.f32 %v3543_v26, %v3493_v33 }
0x1d96   :  { %v4166_v34 = vpop.f32.mrf.mxu1 }
0x1d97   :  { %v3550_v43 = vmax.f32 %v3544_v35, 0.0 }
0x1d98   :  { %v3546_v37 = vpop.f32.mrf.mxu1 }
0x1d99   :  { %v3547_v39 = vadd.f32 %v3546_v37, %v3493_v33 }
0x1d9a   :  { %v4167_v40 = vpop.f32.mrf.mxu1 }
0x1d9b   :  { %v3551_v29 = vmax.f32 %v3547_v39, 0.0 }
0x1d9d   :  { %v3552_v44 = vpack.c.bf16 %v3551_v29, %v3550_v43 }
0x1d9f   :  { %4177 = vmatmul.mubr.msk.bf16.vlgmr.msra.gmra.mxu0 %vm1894_vm5, %v3552_v44 }
0x1e5f   :  { %v3618_v46 = vpop.f32.mrf.mxu0 }
0x1e60   :  { %v3619_v49 = vadd.f32 %v3618_v46, %v3556_v45 }
0x1e61   :  { %v4178_v51 = vpop.f32.mrf.mxu0 }
0x1e62   :  { %v3625_v18 = vadd.f32 %v3619_v49, %v3487_v17 }
0x1e63   :  { %v3621_v32 = vpop.f32.mrf.mxu0 }
0x1e64   :  { %v3622_v53 = vadd.f32 %v3621_v32, %v3556_v45  ;;  %v3627_v22 = vsel %vm241_vm1, %v3625_v18, 0.0 }
0x1e65   :  { %3628 = vadd.xlane.f32.xlu1 %v3627_v22  ;;  %v4179_v54 = vpop.f32.mrf.mxu0 }
0x1e66   :  { %v3626_v55 = vadd.f32 %v3622_v53, %v3488_v28 }
0x1e68   :  { %v3630_v57 = vsel %vm241_vm1, %v3626_v55, 0.0 }
0x1e69   :  { %3631 = vadd.xlane.f32.xlu0 %v3630_v57 }
0x1eee   :  { %v3629_v58 = vpop.xlane.xlu1 %3628 }
0x1eef   :  { %v3633_v21 = vmul.f32 0.03125, %v3629_v58 }
0x1ef1   :  { %v3635_v23 = vsub.f32 %v3625_v18, %v3633_v21 }
0x1ef2   :  { %v3632_v59 = vpop.xlane.xlu0 %3631 }
0x1ef3   :  { %v3634_v60 = vmul.f32 0.03125, %v3632_v59  ;;  %v3637_v3 = vmul.f32 %v3635_v23, %v3635_v23 }
0x1ef5   :  { %v3636_v62 = vsub.f32 %v3626_v55, %v3634_v60  ;;  %v3639_v1 = vsel %vm241_vm1, %v3637_v3, 0.0 }
0x1ef6   :  { %3640 = vadd.xlane.f32.xlu1 %v3639_v1 }
0x1ef7   :  { %v3638_v2 = vmul.f32 %v3636_v62, %v3636_v62 }
0x1ef9   :  { %v3642_v63 = vsel %vm241_vm1, %v3638_v2, 0.0 }
0x1efa   :  { %3643 = vadd.xlane.f32.xlu0 %v3642_v63 }
0x1f7f   :  { %v3641_v5 = vpop.xlane.xlu1 %3640 }
0x1f80   :  { %v3645_v47 = vmul.f32 0.03125, %v3641_v5 }
0x1f82   :  { %v3647_v7 = vadd.f32 1e-05, %v3645_v47 }
0x1f83   :  { %v3644_v9 = vpop.xlane.xlu0 %3643 }
0x1f84   :  { %4345 = vrsqrt.f32 %v3647_v7  ;;  %v3646_v48 = vmul.f32 0.03125, %v3644_v9 }
0x1f86   :  { %v3648_v11 = vadd.f32 1e-05, %v3646_v48 }
0x1f88   :  { %4347 = vrsqrt.f32 %v3648_v11 }
0x1f91   :  { %v4346_v13 = vpop.eup %4345 }
0x1f92   :  { %v3651_v15 = vmul.f32 %v4346_v13, %v3635_v23 }
0x1f94   :  { %v3657_v16 = vmul.f32 %v3656_v12, %v3651_v15 }
0x1f95   :  { %v4348_v19 = vpop.eup %4347 }
0x1f96   :  { %v3652_v0 = vmul.f32 %v4348_v19, %v3636_v62  ;;  %v3663_v52 = vadd.f32 %v3662_v14, %v3657_v16 }
0x1f98   :  { %v3658_v56 = vmul.f32 %v3656_v12, %v3652_v0  ;;  %v3665_v6 = vpack.c.bf16 %v3663_v52, %v3663_v52 }
0x1f9a   :  { %v3664_v8 = vadd.f32 %v3662_v14, %v3658_v56  ;;  %v3675_v20 = vunpack.c.l.b16 %v3665_v6 }
0x1f9c   :  { %v3666_v10 = vpack.c.bf16 %v3664_v8, %v3664_v8  ;;  %v3677_v25 = vrot.slane %v3675_v20, 7 }
0x1f9e   :  { %v3676_v24 = vunpack.c.l.b16 %v3666_v10 }
0x1fa0   :  { %v3678_v27 = vrot.slane %v3676_v24, 6 }
0x1fa2   :  { %v3680_v17 = vsel %vm3679_vm6, %v3678_v27, %v3677_v25 }
0x1fa3   :  { %v3681_v36 = vpack.c.b16 %v3680_v17, %v3680_v17 }
0x1fa5   :  { %4185 = vmatmul.mubr.msk.bf16.vlgmr.msra.gmra.mxu1 %vm241_vm1, %v3681_v36 }
0x2065   :  { %v3731_v50 = vpop.f32.mrf.mxu1 }
0x2066   :  { %v3732_v28 = vadd.f32 %v3838_v41, %v3731_v50 }
0x2067   :  { %v4186_v30 = vpop.f32.mrf.mxu1 }
0x2068   :  { %3738 = vst.msk [vmem:[#allocation16] sm:$0x3] %vm3737_vm7, %v3732_v28 }
0x2069   :  { %v3734_v31 = vpop.f32.mrf.mxu1 }
0x206a   :  { %4520 = shalt.err (!%p4517_p2)
}
0x206b   :  { %3748 = dma.vmem_to_hbm [thread:$0]  %s3746_s5, 32, %s5263_s18, [#allocation4]   ;;  %v4187_v38 = vpop.f32.mrf.mxu1 }
0x206c   :  { %4539 = dma.done.wait [#allocation4], 32  }
0x206d   :  { %4540 = vsyncadd [#allocation4], 4294967264 }
0x206e   :  { %3752 = vsyncpa [#allocation3], 1 }
0x206f   :  { %3753 = vsyncpa [#allocation6], 1 }
0x2070   :  { %3754 = vsyncpa [#allocation9], 1 }
0x2071   :  { %3755 = vsyncpa [#allocation12], 1 }
0x2072   :  { %3756 = vsyncpa [#allocation15], 1 }
0x2073   :  { %3757 = vsyncpa [#allocation4], 1 }

</bundles_post_ra>
